<compile_context>
chip_gen: v5e
topology: v5e:2x2
jax: 0.10.0
libtpu: 0.0.40
codegen_flags: <defaults>
</compile_context>

<pallas_src>
import functools

import jax
import jax.numpy as jnp
from jax.experimental import pallas as pl
from jax.experimental.pallas import tpu as pltpu

_LANE = 128  # TPU lane width; output feature dim is padded to a multiple of this


def _round_up(n, m):
    return ((n + m - 1) // m) * m


def _ae_kernel(x_ref,
               w1_ref, b1_ref,
               w2_ref, b2_ref,
               w3_ref, b3_ref,
               w4_ref, b4_ref,
               o_ref,
               *, matmul_dtype, approx_sigmoid):
    x = x_ref[...]  # (TM, input_dim), already in matmul_dtype

    # --- encoder: Linear(input_dim, 128) -> ReLU -> Linear(128, encoding_dim) ---
    h1 = jnp.dot(x, w1_ref[...], preferred_element_type=jnp.float32) + b1_ref[...]
    h1 = jnp.maximum(h1, 0.0)                                        # ReLU (f32, VPU)
    z = jnp.dot(h1.astype(matmul_dtype), w2_ref[...],
                preferred_element_type=jnp.float32) + b2_ref[...]

    # --- decoder: Linear(enc, 128) -> ReLU -> Linear(128, out_pad) -> Sigmoid ---
    h2 = jnp.dot(z.astype(matmul_dtype), w3_ref[...],
                 preferred_element_type=jnp.float32) + b3_ref[...]
    h2 = jnp.maximum(h2, 0.0)                                        # ReLU (f32, VPU)
    logits = jnp.dot(h2.astype(matmul_dtype), w4_ref[...],
                     preferred_element_type=jnp.float32) + b4_ref[...]

    # Sigmoid: exp on EUP; (approx) reciprocal also on EUP, freeing VALU slots.
    sig = pl.reciprocal(1.0 + jnp.exp(-logits), approx=approx_sigmoid)
    o_ref[...] = sig.astype(o_ref.dtype)


def autoencoder_forward(x, params, *,
                        block_m=256,
                        matmul_dtype=jnp.bfloat16,
                        approx_sigmoid=True,
                        vmem_limit_bytes=64 * 1024 * 1024):
    """Fused autoencoder forward. x: (B, input_dim) f32 -> (B, input_dim) f32."""
    B, input_dim = x.shape
    hidden = params["w1"].shape[1]
    enc_dim = params["w2"].shape[1]

    # Lane-dense output: pad the last layer's output width up to a multiple of 128.
    out_dim = _round_up(input_dim, _LANE)
    w4 = params["w4"]
    b4 = params["b4"]
    if out_dim != w4.shape[1]:
        w4 = jnp.pad(w4, ((0, 0), (0, out_dim - w4.shape[1])))
        b4 = jnp.pad(b4, ((0, 0), (0, out_dim - b4.shape[1])))

    # Batch tiling: TM rows per grid step (multiple of 8 sublanes), pad B up to it.
    tm = min(block_m, _round_up(B, 8))
    Bp = _round_up(B, tm)
    xp = x if Bp == B else jnp.pad(x, ((0, Bp - B), (0, 0)))

    # Cast matmul operands once in the wrapper (halves HBM->VMEM bytes when bf16).
    xp = xp.astype(matmul_dtype)
    w1 = params["w1"].astype(matmul_dtype)
    w2 = params["w2"].astype(matmul_dtype)
    w3 = params["w3"].astype(matmul_dtype)
    w4 = w4.astype(matmul_dtype)
    # Biases (and all elementwise work) stay f32.
    b1 = params["b1"].astype(jnp.float32)
    b2 = params["b2"].astype(jnp.float32)
    b3 = params["b3"].astype(jnp.float32)
    b4 = b4.astype(jnp.float32)

    grid = (pl.cdiv(Bp, tm),)
    tile_map = lambda i: (i, 0)     # batch-tiled arrays
    resident = lambda i: (0, 0)     # weights/biases: same block every step -> stay in VMEM

    in_specs = [
        pl.BlockSpec((tm, input_dim), tile_map),
        pl.BlockSpec(w1.shape, resident), pl.BlockSpec(b1.shape, resident),
        pl.BlockSpec(w2.shape, resident), pl.BlockSpec(b2.shape, resident),
        pl.BlockSpec(w3.shape, resident), pl.BlockSpec(b3.shape, resident),
        pl.BlockSpec(w4.shape, resident), pl.BlockSpec(b4.shape, resident),
    ]
    out_specs = pl.BlockSpec((tm, out_dim), tile_map)

    nbytes = lambda a: int(a.size) * a.dtype.itemsize
    flops = 2 * Bp * (input_dim * hidden + hidden * enc_dim
                      + enc_dim * hidden + hidden * out_dim)
    bytes_accessed = (nbytes(xp) + nbytes(w1) + nbytes(w2) + nbytes(w3) + nbytes(w4)
                      + nbytes(b1) + nbytes(b2) + nbytes(b3) + nbytes(b4)
                      + Bp * out_dim * 4)
    cost = pl.CostEstimate(flops=flops,
                           transcendentals=Bp * out_dim,
                           bytes_accessed=bytes_accessed)

    kernel = functools.partial(_ae_kernel,
                               matmul_dtype=matmul_dtype,
                               approx_sigmoid=approx_sigmoid)

    out = pl.pallas_call(
        kernel,
        out_shape=jax.ShapeDtypeStruct((Bp, out_dim), jnp.float32),
        grid_spec=pltpu.PrefetchScalarGridSpec(
            num_scalar_prefetch=0,
            grid=grid,
            in_specs=in_specs,
            out_specs=out_specs,
        ),
        compiler_params=pltpu.CompilerParams(
            dimension_semantics=("parallel",),   # batch tiles independent (2 TCs on v7x)
            vmem_limit_bytes=vmem_limit_bytes,   # explicit budget (v7x has 64 MiB total)
        ),
        cost_estimate=cost,
    )(xp, w1, b1, w2, b2, w3, b3, w4, b4)

    return out[:B, :input_dim]


def init_params(key, input_dim, encoding_dim, hidden=128):
    """Deterministic init mimicking PyTorch nn.Linear default U[-1/sqrt(fan_in), +1/sqrt(fan_in)]."""
    def linear(k, fan_in, fan_out):
        kw, kb = jax.random.split(k)
        bound = 1.0 / jnp.sqrt(fan_in)
        w = jax.random.uniform(kw, (fan_in, fan_out), jnp.float32, -bound, bound)
        b = jax.random.uniform(kb, (1, fan_out), jnp.float32, -bound, bound)
        return w, b

    k1, k2, k3, k4 = jax.random.split(key, 4)
    w1, b1 = linear(k1, input_dim, hidden)        # encoder Linear(input_dim, 128)
    w2, b2 = linear(k2, hidden, encoding_dim)     # encoder Linear(128, encoding_dim)
    w3, b3 = linear(k3, encoding_dim, hidden)     # decoder Linear(encoding_dim, 128)
    w4, b4 = linear(k4, hidden, input_dim)        # decoder Linear(128, input_dim)
    return dict(w1=w1, b1=b1, w2=w2, b2=b2, w3=w3, b3=b3, w4=w4, b4=b4)


def autoencoder_ref(x, p):
    """Pure-JAX f32 reference (matches the PyTorch module's forward)."""
    h = jnp.maximum(x @ p["w1"] + p["b1"], 0.0)
    z = h @ p["w2"] + p["b2"]
    h = jnp.maximum(z @ p["w3"] + p["b3"], 0.0)
    return jax.nn.sigmoid(h @ p["w4"] + p["b4"])


if __name__ == "__main__":
    key = jax.random.PRNGKey(0)
    k_param, k_x = jax.random.split(key)

    batch = 512          # multiple batch tiles so the grid pipeline is exercised
    input_dim = 32
    encoding_dim = 16

    params = init_params(k_param, input_dim, encoding_dim)
    x = jax.random.uniform(k_x, (batch, input_dim), jnp.float32)

    ref = autoencoder_ref(x, params)

    # (1) Exact-semantics check: f32 matmuls + exact sigmoid, tight tolerance.
    out_f32 = autoencoder_forward(x, params,
                                  matmul_dtype=jnp.float32,
                                  approx_sigmoid=False)
    out_f32 = jax.block_until_ready(out_f32)
    assert out_f32.shape == (batch, input_dim), out_f32.shape
    assert jnp.allclose(out_f32, ref, atol=1e-5, rtol=1e-5), "f32 kernel mismatch vs reference"

    # (2) Performance config: bf16 matmul operands + approx-reciprocal sigmoid.
    out_fast = autoencoder_forward(x, params)   # defaults: bf16 + approx sigmoid
    out_fast = jax.block_until_ready(out_fast)
    assert out_fast.shape == (batch, input_dim), out_fast.shape
    assert jnp.allclose(out_fast, ref, atol=3e-2), "bf16 kernel diverged from f32 reference"

    print("KERNEL_OK")
</pallas_src>

<mosaic_0001>
module attributes {stable_mosaic.version = 11 : i64} {
  func.func @_ae_kernel(%arg0: i32, %arg1: memref<256x32xf32, #tpu.memory_space<vmem>>, %arg2: memref<32x128xf32, #tpu.memory_space<vmem>>, %arg3: memref<1x128xf32, #tpu.memory_space<vmem>>, %arg4: memref<128x16xf32, #tpu.memory_space<vmem>>, %arg5: memref<1x16xf32, #tpu.memory_space<vmem>>, %arg6: memref<16x128xf32, #tpu.memory_space<vmem>>, %arg7: memref<1x128xf32, #tpu.memory_space<vmem>>, %arg8: memref<128x128xf32, #tpu.memory_space<vmem>>, %arg9: memref<1x128xf32, #tpu.memory_space<vmem>>, %arg10: memref<256x128xf32, #tpu.memory_space<vmem>>) attributes {dimension_semantics = [#tpu.dimension_semantics<parallel>], iteration_bounds = array<i64: 2>, scalar_prefetch = 0 : i64, scratch_operands = 0 : i64, tpu.core_type = #tpu.core_type<tc>, window_params = [{transform_indices = @transform_0, window_bounds = array<i64: 256, 32>}, {pipeline_mode = #tpu.pipeline_mode<synchronous>, transform_indices = @transform_1, window_bounds = array<i64: 32, 128>}, {pipeline_mode = #tpu.pipeline_mode<synchronous>, transform_indices = @transform_2, window_bounds = array<i64: 1, 128>}, {pipeline_mode = #tpu.pipeline_mode<synchronous>, transform_indices = @transform_3, window_bounds = array<i64: 128, 16>}, {pipeline_mode = #tpu.pipeline_mode<synchronous>, transform_indices = @transform_4, window_bounds = array<i64: 1, 16>}, {pipeline_mode = #tpu.pipeline_mode<synchronous>, transform_indices = @transform_5, window_bounds = array<i64: 16, 128>}, {pipeline_mode = #tpu.pipeline_mode<synchronous>, transform_indices = @transform_6, window_bounds = array<i64: 1, 128>}, {pipeline_mode = #tpu.pipeline_mode<synchronous>, transform_indices = @transform_7, window_bounds = array<i64: 128, 128>}, {pipeline_mode = #tpu.pipeline_mode<synchronous>, transform_indices = @transform_8, window_bounds = array<i64: 1, 128>}, {transform_indices = @transform_9, window_bounds = array<i64: 256, 128>}]} {
    %c0 = arith.constant 0 : index
    %c0_0 = arith.constant 0 : index
    %0 = vector.load %arg1[%c0, %c0_0] : memref<256x32xf32, #tpu.memory_space<vmem>>, vector<256x32xf32>
    %c0_1 = arith.constant 0 : index
    %c0_2 = arith.constant 0 : index
    %1 = vector.load %arg2[%c0_1, %c0_2] : memref<32x128xf32, #tpu.memory_space<vmem>>, vector<32x128xf32>
    %cst = arith.constant dense<0.000000e+00> : vector<256x128xf32>
    %2 = tpu.matmul %0, %1, %cst {dimension_numbers = #tpu.dot_dimension_numbers<[1], [0], [0], [1], [0, 0, 1, 1], [], []>} : vector<256x32xf32>, vector<32x128xf32>, vector<256x128xf32> -> vector<256x128xf32>
    %c0_3 = arith.constant 0 : index
    %c0_4 = arith.constant 0 : index
    %3 = vector.load %arg3[%c0_3, %c0_4] : memref<1x128xf32, #tpu.memory_space<vmem>>, vector<1x128xf32>
    %4 = vector.broadcast %3 : vector<1x128xf32> to vector<256x128xf32>
    %5 = arith.addf %2, %4 : vector<256x128xf32>
    %cst_5 = arith.constant 0.000000e+00 : f32
    %6 = vector.broadcast %cst_5 : f32 to vector<256x128xf32>
    %7 = arith.maximumf %5, %6 : vector<256x128xf32>
    %c0_6 = arith.constant 0 : index
    %c0_7 = arith.constant 0 : index
    %8 = vector.load %arg4[%c0_6, %c0_7] : memref<128x16xf32, #tpu.memory_space<vmem>>, vector<128x16xf32>
    %cst_8 = arith.constant dense<0.000000e+00> : vector<256x16xf32>
    %9 = tpu.matmul %7, %8, %cst_8 {dimension_numbers = #tpu.dot_dimension_numbers<[1], [0], [0], [1], [0, 0, 1, 1], [], []>} : vector<256x128xf32>, vector<128x16xf32>, vector<256x16xf32> -> vector<256x16xf32>
    %c0_9 = arith.constant 0 : index
    %c0_10 = arith.constant 0 : index
    %10 = vector.load %arg5[%c0_9, %c0_10] : memref<1x16xf32, #tpu.memory_space<vmem>>, vector<1x16xf32>
    %11 = vector.broadcast %10 : vector<1x16xf32> to vector<256x16xf32>
    %12 = arith.addf %9, %11 : vector<256x16xf32>
    %c0_11 = arith.constant 0 : index
    %c0_12 = arith.constant 0 : index
    %13 = vector.load %arg6[%c0_11, %c0_12] : memref<16x128xf32, #tpu.memory_space<vmem>>, vector<16x128xf32>
    %cst_13 = arith.constant dense<0.000000e+00> : vector<256x128xf32>
    %14 = tpu.matmul %12, %13, %cst_13 {dimension_numbers = #tpu.dot_dimension_numbers<[1], [0], [0], [1], [0, 0, 1, 1], [], []>} : vector<256x16xf32>, vector<16x128xf32>, vector<256x128xf32> -> vector<256x128xf32>
    %c0_14 = arith.constant 0 : index
    %c0_15 = arith.constant 0 : index
    %15 = vector.load %arg7[%c0_14, %c0_15] : memref<1x128xf32, #tpu.memory_space<vmem>>, vector<1x128xf32>
    %16 = vector.broadcast %15 : vector<1x128xf32> to vector<256x128xf32>
    %17 = arith.addf %14, %16 : vector<256x128xf32>
    %cst_16 = arith.constant 0.000000e+00 : f32
    %18 = vector.broadcast %cst_16 : f32 to vector<256x128xf32>
    %19 = arith.maximumf %17, %18 : vector<256x128xf32>
    %c0_17 = arith.constant 0 : index
    %c0_18 = arith.constant 0 : index
    %20 = vector.load %arg8[%c0_17, %c0_18] : memref<128x128xf32, #tpu.memory_space<vmem>>, vector<128x128xf32>
    %cst_19 = arith.constant dense<0.000000e+00> : vector<256x128xf32>
    %21 = tpu.matmul %19, %20, %cst_19 {dimension_numbers = #tpu.dot_dimension_numbers<[1], [0], [0], [1], [0, 0, 1, 1], [], []>} : vector<256x128xf32>, vector<128x128xf32>, vector<256x128xf32> -> vector<256x128xf32>
    %c0_20 = arith.constant 0 : index
    %c0_21 = arith.constant 0 : index
    %22 = vector.load %arg9[%c0_20, %c0_21] : memref<1x128xf32, #tpu.memory_space<vmem>>, vector<1x128xf32>
    %23 = vector.broadcast %22 : vector<1x128xf32> to vector<256x128xf32>
    %24 = arith.addf %21, %23 : vector<256x128xf32>
    %cst_22 = arith.constant 0.000000e+00 : f32
    %25 = vector.broadcast %cst_22 : f32 to vector<256x128xf32>
    %26 = arith.subf %25, %24 : vector<256x128xf32>
    %27 = math.exp %26 : vector<256x128xf32>
    %cst_23 = arith.constant 1.000000e+00 : f32
    %28 = vector.broadcast %cst_23 : f32 to vector<256x128xf32>
    %29 = arith.addf %28, %27 : vector<256x128xf32>
    %30 = tpu.reciprocal %29 : vector<256x128xf32> -> vector<256x128xf32>
    %c0_24 = arith.constant 0 : index
    %c0_25 = arith.constant 0 : index
    %31 = vector.load %arg10[%c0_24, %c0_25] : memref<256x128xf32, #tpu.memory_space<vmem>>, vector<256x128xf32>
    tpu.vector_store %arg10[%c0_24, %c0_25], %30 {strides = array<i32>} : memref<256x128xf32, #tpu.memory_space<vmem>>, vector<256x128xf32>,
    return
  }
  func.func @transform_0(%arg0: i32) -> (i32, i32) {
    %c0_i32 = arith.constant 0 : i32
    %c0_i32_0 = arith.constant 0 : i32
    return %arg0, %c0_i32 : i32, i32
  }
  func.func @transform_1(%arg0: i32) -> (i32, i32) {
    %c0_i32 = arith.constant 0 : i32
    %c0_i32_0 = arith.constant 0 : i32
    %c0_i32_1 = arith.constant 0 : i32
    return %c0_i32, %c0_i32_0 : i32, i32
  }
  func.func @transform_2(%arg0: i32) -> (i32, i32) {
    %c0_i32 = arith.constant 0 : i32
    %c0_i32_0 = arith.constant 0 : i32
    %c0_i32_1 = arith.constant 0 : i32
    return %c0_i32, %c0_i32_0 : i32, i32
  }
  func.func @transform_3(%arg0: i32) -> (i32, i32) {
    %c0_i32 = arith.constant 0 : i32
    %c0_i32_0 = arith.constant 0 : i32
    %c0_i32_1 = arith.constant 0 : i32
    return %c0_i32, %c0_i32_0 : i32, i32
  }
  func.func @transform_4(%arg0: i32) -> (i32, i32) {
    %c0_i32 = arith.constant 0 : i32
    %c0_i32_0 = arith.constant 0 : i32
    %c0_i32_1 = arith.constant 0 : i32
    return %c0_i32, %c0_i32_0 : i32, i32
  }
  func.func @transform_5(%arg0: i32) -> (i32, i32) {
    %c0_i32 = arith.constant 0 : i32
    %c0_i32_0 = arith.constant 0 : i32
    %c0_i32_1 = arith.constant 0 : i32
    return %c0_i32, %c0_i32_0 : i32, i32
  }
  func.func @transform_6(%arg0: i32) -> (i32, i32) {
    %c0_i32 = arith.constant 0 : i32
    %c0_i32_0 = arith.constant 0 : i32
    %c0_i32_1 = arith.constant 0 : i32
    return %c0_i32, %c0_i32_0 : i32, i32
  }
  func.func @transform_7(%arg0: i32) -> (i32, i32) {
    %c0_i32 = arith.constant 0 : i32
    %c0_i32_0 = arith.constant 0 : i32
    %c0_i32_1 = arith.constant 0 : i32
    return %c0_i32, %c0_i32_0 : i32, i32
  }
  func.func @transform_8(%arg0: i32) -> (i32, i32) {
    %c0_i32 = arith.constant 0 : i32
    %c0_i32_0 = arith.constant 0 : i32
    %c0_i32_1 = arith.constant 0 : i32
    return %c0_i32, %c0_i32_0 : i32, i32
  }
  func.func @transform_9(%arg0: i32) -> (i32, i32) {
    %c0_i32 = arith.constant 0 : i32
    %c0_i32_0 = arith.constant 0 : i32
    return %arg0, %c0_i32 : i32, i32
  }
}

</mosaic_0001>

<bundles_post_ra>
// kernel: tpu_custom_call.1
= control target key start
LH: loop header
LB: loop body
LE: loop exit
PB: predicated region body
PF: predicated region fallthrough
CT: control target
= control target key end

     0   :  { %14 = vsyncpa [#allocation3], 0  ;;  %s2671_s0 = inlined_call_operand.vmem [shape: f32[512,32], index: 0, kind: input, shape index: {}]   ;;  %s2672_s1 = inlined_call_operand.vmem [shape: f32[32,128], index: 1, kind: input, shape index: {}]   ;;  %s2673_s2 = inlined_call_operand.vmem [shape: f32[1,128], index: 2, kind: input, shape index: {}]   ;;  %s2674_s3 = inlined_call_operand.vmem [shape: f32[128,16], index: 3, kind: input, shape index: {}]   ;;  %s2675_s4 = inlined_call_operand.vmem [shape: f32[1,16], index: 4, kind: input, shape index: {}]   ;;  %s2676_s5 = inlined_call_operand.vmem [shape: f32[16,128], index: 5, kind: input, shape index: {}]   ;;  %s2677_s6 = inlined_call_operand.vmem [shape: f32[1,128], index: 6, kind: input, shape index: {}]   ;;  %s2678_s7 = inlined_call_operand.vmem [shape: f32[128,128], index: 7, kind: input, shape index: {}]   ;;  %s2679_s8 = inlined_call_operand.vmem [shape: f32[1,128], index: 8, kind: input, shape index: {}]   ;;  %s2680_s9 = inlined_call_operand.hbm [shape: f32[512,128], index: 9, kind: output, shape index: {}]  }
   0x1   :  { %16 = vsyncpa [#allocation3 + $0x1], 0  ;;  %s2183_s30 = smov 0   ;;  %s2185_s10 = smov 0  }
   0x2   :  { %s2187_s11 = smov 0   ;;  %s2189_s12 = smov 0  }
   0x3 LB: > { %s2204_s13 = sadd.s32 4294967295, %s2129_s12   ;;  %s1816_s14 = sadd.s32 4294967294, %s2129_s12   ;;  %s2129_s12 = sphi %s2189_s12, %s2686_s12   ;;  %s2125_s11 = sphi %s2187_s11, %s2685_s11   ;;  %s2121_s10 = sphi %s2185_s10, %s2684_s10   ;;  %s2117_s30 = sphi %s2183_s30, %s2683_s30  }
   0x4   : > { %s2208_s15 = sadd.s32 1, %s2129_s12   ;;  %s223_s16 = sadd.s32 1, %s2125_s11 }
   0x5   : > { %s220_s17 = ssub.s32 %s2129_s12, %s2208_s15  ;;  %p233_p0 = scmp.ne.s32.totalorder %s2125_s11, %s2121_s10 }
   0x6   : > { %p221_p1 = scmp.eq.s32.totalorder %s220_s17, 0  ;;  %p234_p2 = scmp.eq.s32.totalorder %s2204_s13, 1 }
   0x7   : > { %p239_p3 = scmp.ne.s32.totalorder %s2121_s10, %s2117_s30  ;;  %p240_p4 = scmp.eq.s32.totalorder %s1816_s14, 1 }
   0x8   : > { %s2219_s18 = scalar_select %p221_p1, %s2125_s11, %s223_s16  }
   0x9   : > { %p2221_p5 = por %p234_p2, %p233_p0  ;;  %p2225_p6 = por %p240_p4, %p239_p3 }
   0xa   : > { %p1819_p7 = scmp.ge.s32.totalorder %s2129_s12, 1  ;;  %p291_p8 = scmp.lt.s32.totalorder %s2129_s12, 3 }
   0xc   : > { %p292_p9 = pnand %p1819_p7, %p291_p8 }
   0xd   : > { %s1821_s25 = sshll.u32 (!%p292_p9), %s2204_s13, 5  ;;  %s1892_s22 = sshll.u32 (!%p292_p9), %s2204_s13, 8 }
   0xe   : > { %295 = sbr.rel (%p292_p9) target bundleno = 837 (0x345), region = 56  ;;  %p328_p10 = scmp.lt.s32.totalorder (!%p292_p9), %s1821_s25, 63 }
  0x13   : > { %v369_v0 = vld [vmem:[%s2672_s1 + $0x18] sm:$0xff]  ;;  %v368_v1 = vld [vmem:[%s2672_s1 + $0x10] sm:$0xff]  ;;  %v367_v2 = vld [vmem:[%s2672_s1 + $0x8] sm:$0xff]  ;;  %s2688_s25 = smov (!%p328_p10, %s1821_s25), 63  ;;  %vm374_vm0 = vcmask 261120   ;;  %vm755_vm1 = vcmask 130048  }
  0x14   : > { %483 = vmatpush.msra.mxu0 %v369_v0  ;;  %v366_v3 = vld [vmem:[%s2672_s1] sm:$0xff]  ;;  %s1822_s14 = sshll.u32 %s2688_s25, 3  ;;  %v631_v13 = vld [vmem:[%s2674_s3 + $0x78] sm:$0xff]  ;;  %v630_v14 = vld [vmem:[%s2674_s3 + $0x70] sm:$0xff]  ;;  %s1750_s25 = scalar_lea.hbm %s2680_s9, %s1892_s22 }
  0x15   : > { %s2247_s21 = scalar_lea.vmem %s2671_s0, %s1822_s14  ;;  %636 = vmatpush.msra.mxu1 %v631_v13  ;;  %v629_v15 = vld [vmem:[%s2674_s3 + $0x68] sm:$0xff]  ;;  %v628_v17 = vld [vmem:[%s2674_s3 + $0x60] sm:$0xff]  ;;  %v627_v18 = vld [vmem:[%s2674_s3 + $0x58] sm:$0xff]  ;;  %s1753_s26 = sshll.u32 %s1750_s25, 4  ;;  %s1754_s26 = int_to_ptr.hbm [resolvable:$true] %s1753_s26 }
  0x16   : > { %484 = vmatpush.msra.mxu0 %v368_v1  ;;  %v334_v4 = vld [vmem:[%s2247_s21] sm:$0xff]  ;;  %v335_v5 = vld [vmem:[%s2247_s21 + $0x8] sm:$0xff]  ;;  %v336_v6 = vld [vmem:[%s2247_s21 + $0x10] sm:$0xff]  ;;  %s2081_s28 = sshra.s32 %s1754_s26, 4  ;;  %s2087_s22 = scalar_lea.hbm %s2680_s9, 512  ;;  %s2082_s28 = int_to_ptr.hbm [resolvable:$true] %s2081_s28 }
  0x17   : > { %v337_v7 = vld [vmem:[%s2247_s21 + $0x18] sm:$0xff]  ;;  %v338_v8 = vld [vmem:[%s2247_s21 + $0x20] sm:$0xff]  ;;  %v339_v9 = vld [vmem:[%s2247_s21 + $0x28] sm:$0xff]  ;;  %637 = vmatpush.msra.mxu1 %v630_v14  ;;  %p2088_p0 = scmp.lt.s32.totalorder %s2082_s28, %s2680_s9 }
  0x18   : > { %485 = vmatpush.msra.mxu0 %v367_v2  ;;  %v340_v10 = vld [vmem:[%s2247_s21 + $0x30] sm:$0xff]  ;;  %v341_v11 = vld [vmem:[%s2247_s21 + $0x38] sm:$0xff]  ;;  %v342_v12 = vld [vmem:[%s2247_s21 + $0x40] sm:$0xff] }
  0x19   : > { %v343_v16 = vld [vmem:[%s2247_s21 + $0x48] sm:$0xff]  ;;  %638 = vmatpush.msra.mxu1 %v629_v15  ;;  %v626_v19 = vld [vmem:[%s2674_s3 + $0x50] sm:$0xff]  ;;  %v624_v22 = vld [vmem:[%s2674_s3 + $0x40] sm:$0xff] }
  0x1a   : > { %486 = vmatpush.msra.mxu0 %v366_v3  ;;  %v625_v20 = vld [vmem:[%s2674_s3 + $0x48] sm:$0xff]  ;;  %v344_v21 = vld [vmem:[%s2247_s21 + $0x50] sm:$0xff]  ;;  %v623_v23 = vld [vmem:[%s2674_s3 + $0x38] sm:$0xff] }
  0x1b   : > { %1823 = vmatmul.msk.f32.vlgmr.msra.gmra.mxu0 %vm374_vm0, %v334_v4  ;;  %639 = vmatpush.msra.mxu1 %v628_v17  ;;  %v622_v24 = vld [vmem:[%s2674_s3 + $0x30] sm:$0xff]  ;;  %v621_v25 = vld [vmem:[%s2674_s3 + $0x28] sm:$0xff]  ;;  %v345_v26 = vld [vmem:[%s2247_s21 + $0x58] sm:$0xff] }
  0x1c   : > { %v620_v27 = vld [vmem:[%s2674_s3 + $0x20] sm:$0xff]  ;;  %v619_v28 = vld [vmem:[%s2674_s3 + $0x18] sm:$0xff]  ;;  %v618_v29 = vld [vmem:[%s2674_s3 + $0x10] sm:$0xff] }
  0x1d   : > { %640 = vmatpush.msra.mxu1 %v627_v18  ;;  %v346_v30 = vld [vmem:[%s2247_s21 + $0x60] sm:$0xff]  ;;  %v617_v31 = vld [vmem:[%s2674_s3 + $0x8] sm:$0xff]  ;;  %v348_v34 = vld [vmem:[%s2247_s21 + $0x70] sm:$0xff] }
  0x1e   : > { %v616_v32 = vld [vmem:[%s2674_s3] sm:$0xff]  ;;  %v347_v33 = vld [vmem:[%s2247_s21 + $0x68] sm:$0xff]  ;;  %v349_v35 = vld [vmem:[%s2247_s21 + $0x78] sm:$0xff] }
  0x1f   : > { %641 = vmatpush.msra.mxu1 %v626_v19  ;;  %v2332_v36 = vld [vmem:[%s2673_s2] ss:$0 sm:$0xff]  ;;  %v351_v42 = vld [vmem:[%s2247_s21 + $0x88] sm:$0xff]  ;;  %v352_v46 = vld [vmem:[%s2247_s21 + $0x90] sm:$0xff] }
  0x20   : > { %v350_v38 = vld [vmem:[%s2247_s21 + $0x80] sm:$0xff]  ;;  %v353_v50 = vld [vmem:[%s2247_s21 + $0x98] sm:$0xff]  ;;  %v355_v58 = vld [vmem:[%s2247_s21 + $0xa8] sm:$0xff] }
  0x21   : > { %642 = vmatpush.msra.mxu1 %v625_v20  ;;  %v354_v54 = vld [vmem:[%s2247_s21 + $0xa0] sm:$0xff]  ;;  %v356_v62 = vld [vmem:[%s2247_s21 + $0xb0] sm:$0xff]  ;;  %v357_v2 = vld [vmem:[%s2247_s21 + $0xb8] sm:$0xff] }
  0x22   : > { %v360_v14 = vld [vmem:[%s2247_s21 + $0xd0] sm:$0xff]  ;;  %v361_v18 = vld [vmem:[%s2247_s21 + $0xd8] sm:$0xff] }
  0x23   : > { %1824 = vmatmul.msk.f32.gmra.mxu0 %vm374_vm0, %v335_v5  ;;  %643 = vmatpush.msra.mxu1 %v624_v22  ;;  %v362_v22 = vld [vmem:[%s2247_s21 + $0xe0] sm:$0xff] }
  0x25   : > { %644 = vmatpush.msra.mxu1 %v623_v23 }
  0x27   : > { %645 = vmatpush.msra.mxu1 %v622_v24  ;;  %v750_v24 = vld [vmem:[%s2676_s5 + $0x8] sm:$0xff] }
  0x28   : > { %866 = vmatpush.msra.mxu2 %v750_v24 }
  0x29   : > { %646 = vmatpush.msra.mxu1 %v621_v25 }
  0x2b   : > { %1825 = vmatmul.msk.f32.gmra.mxu0 %vm374_vm0, %v336_v6  ;;  %647 = vmatpush.msra.mxu1 %v620_v27  ;;  %v358_v6 = vld [vmem:[%s2247_s21 + $0xc0] sm:$0xff] }
  0x2d   : > { %648 = vmatpush.msra.mxu1 %v619_v28  ;;  %v363_v28 = vld [vmem:[%s2247_s21 + $0xe8] sm:$0xff] }
  0x2f   : > { %649 = vmatpush.msra.mxu1 %v618_v29 }
  0x31   : > { %650 = vmatpush.msra.mxu1 %v617_v31 }
  0x33   : > { %1826 = vmatmul.msk.f32.gmra.mxu0 %vm374_vm0, %v337_v7  ;;  %651 = vmatpush.msra.mxu1 %v616_v32  ;;  %v364_v32 = vld [vmem:[%s2247_s21 + $0xf0] sm:$0xff] }
  0x3b   : > { %1827 = vmatmul.msk.f32.gmra.mxu0 %vm374_vm0, %v338_v8 }
  0x43   : > { %1828 = vmatmul.msk.f32.gmra.mxu0 %vm374_vm0, %v339_v9 }
  0x4b   : > { %1829 = vmatmul.msk.f32.gmra.mxu0 %vm374_vm0, %v340_v10  ;;  %v359_v10 = vld [vmem:[%s2247_s21 + $0xc8] sm:$0xff] }
  0x53   : > { %1830 = vmatmul.msk.f32.gmra.mxu0 %vm374_vm0, %v341_v11 }
  0x5b   : > { %1831 = vmatmul.msk.f32.gmra.mxu0 %vm374_vm0, %v342_v12 }
  0x63   : > { %1832 = vmatmul.msk.f32.gmra.mxu0 %vm374_vm0, %v343_v16 }
  0x6b   : > { %1833 = vmatmul.msk.f32.gmra.mxu0 %vm374_vm0, %v344_v21 }
  0x73   : > { %1834 = vmatmul.msk.f32.gmra.mxu0 %vm374_vm0, %v345_v26  ;;  %v749_v26 = vld [vmem:[%s2676_s5] sm:$0xff] }
  0x74   : > { %867 = vmatpush.msra.mxu2 %v749_v26 }
  0x7b   : > { %1835 = vmatmul.msk.f32.gmra.mxu0 %vm374_vm0, %v346_v30 }
  0x83   : > { %1836 = vmatmul.msk.f32.gmra.mxu0 %vm374_vm0, %v347_v33 }
  0x8b   : > { %1837 = vmatmul.msk.f32.gmra.mxu0 %vm374_vm0, %v348_v34 }
  0x93   : > { %1838 = vmatmul.msk.f32.gmra.mxu0 %vm374_vm0, %v349_v35 }
  0x98   : > { %v488_v37 = vpop.f32.mrf.mxu0 }
  0x99   : > { %v489_v39 = vadd.f32 %v2332_v36, %v488_v37  ;;  %v365_v37 = vld [vmem:[%s2247_s21 + $0xf8] sm:$0xff]  ;;  %s324_s21 = sand.u32 1, %s2121_s10  }
  0x9a   : > { %s1820_s29 = sshll.u32 %s324_s21, 8  ;;  %s1739_s27 = scalar_lea.sflag [#allocation3], %s324_s21 }
  0x9b   : > { %1839 = vmatmul.msk.f32.gmra.mxu0 %vm374_vm0, %v350_v38  ;;  %v584_v40 = vmax.f32 %v489_v39, 0.0  ;;  %s2559_s14 = scalar_lea.vmem [#allocation2], %s1820_s29  ;;  %s2083_s29 = scalar_lea.hbm %s2082_s28, 256 }
  0x9c   : > { %s1751_s13 = sshll.u32 %s2559_s14, 4  ;;  %p2084_p11 = scmp.ne.s32.totalorder %s2082_s28, %s2083_s29  ;;  %s1752_s13 = int_to_ptr.vmem [resolvable:$true] %s1751_s13 }
  0x9d   : > { %652 = vmatmul.f32.vlgmr.msra.gmra.mxu1 %v584_v40  ;;  %v2391_v40 = vld [vmem:[%s2675_s4] ss:$0 sm:$0xff]  ;;  %p2089_p1 = scmp.lt.s32.totalorder %s2087_s22, %s2083_s29 }
  0x9e   : > { %p2085_p12 = pnand %p2084_p11, %p2221_p5 }
  0x9f   : > { %p2090_p2 = por %p2089_p1, %p2088_p0 }
  0xa0   : > { %v491_v41 = vpop.f32.mrf.mxu0  ;;  %p2086_p13 = pneg %p2085_p12 }
  0xa1   : > { %v492_v43 = vadd.f32 %v2332_v36, %v491_v41 }
  0xa2   : > { %p2091_p3 = pnand %p2090_p2, %p2086_p13 }
  0xa3   : > { %1840 = vmatmul.msk.f32.gmra.mxu0 %vm374_vm0, %v351_v42  ;;  %v585_v44 = vmax.f32 %v492_v43, 0.0 }
  0xa5   : > { %655 = vmatmul.f32.gmra.mxu1 %v585_v44 }
  0xa8   : > { %v494_v45 = vpop.f32.mrf.mxu0 }
  0xa9   : > { %v495_v47 = vadd.f32 %v2332_v36, %v494_v45 }
  0xab   : > { %1841 = vmatmul.msk.f32.gmra.mxu0 %vm374_vm0, %v352_v46  ;;  %v586_v48 = vmax.f32 %v495_v47, 0.0 }
  0xad   : > { %658 = vmatmul.f32.gmra.mxu1 %v586_v48 }
  0xb0   : > { %v497_v49 = vpop.f32.mrf.mxu0 }
  0xb1   : > { %v498_v51 = vadd.f32 %v2332_v36, %v497_v49 }
  0xb3   : > { %1842 = vmatmul.msk.f32.gmra.mxu0 %vm374_vm0, %v353_v50  ;;  %v587_v52 = vmax.f32 %v498_v51, 0.0 }
  0xb5   : > { %661 = vmatmul.f32.gmra.mxu1 %v587_v52 }
  0xb8   : > { %v500_v53 = vpop.f32.mrf.mxu0 }
  0xb9   : > { %v501_v55 = vadd.f32 %v2332_v36, %v500_v53 }
  0xbb   : > { %1843 = vmatmul.msk.f32.gmra.mxu0 %vm374_vm0, %v354_v54  ;;  %v588_v56 = vmax.f32 %v501_v55, 0.0 }
  0xbd   : > { %664 = vmatmul.f32.gmra.mxu1 %v588_v56 }
  0xc0   : > { %v503_v57 = vpop.f32.mrf.mxu0 }
  0xc1   : > { %v504_v59 = vadd.f32 %v2332_v36, %v503_v57 }
  0xc3   : > { %1844 = vmatmul.msk.f32.gmra.mxu0 %vm374_vm0, %v355_v58  ;;  %v589_v60 = vmax.f32 %v504_v59, 0.0 }
  0xc5   : > { %667 = vmatmul.f32.gmra.mxu1 %v589_v60 }
  0xc8   : > { %v506_v61 = vpop.f32.mrf.mxu0 }
  0xc9   : > { %v507_v63 = vadd.f32 %v2332_v36, %v506_v61 }
  0xcb   : > { %1845 = vmatmul.msk.f32.gmra.mxu0 %vm374_vm0, %v356_v62  ;;  %v590_v0 = vmax.f32 %v507_v63, 0.0 }
  0xcd   : > { %670 = vmatmul.f32.gmra.mxu1 %v590_v0 }
  0xd0   : > { %v509_v1 = vpop.f32.mrf.mxu0 }
  0xd1   : > { %v510_v3 = vadd.f32 %v2332_v36, %v509_v1 }
  0xd3   : > { %1846 = vmatmul.msk.f32.gmra.mxu0 %vm374_vm0, %v357_v2  ;;  %v591_v4 = vmax.f32 %v510_v3, 0.0 }
  0xd5   : > { %673 = vmatmul.f32.gmra.mxu1 %v591_v4 }
  0xd8   : > { %v512_v5 = vpop.f32.mrf.mxu0 }
  0xd9   : > { %v513_v7 = vadd.f32 %v2332_v36, %v512_v5 }
  0xdb   : > { %v592_v8 = vmax.f32 %v513_v7, 0.0  ;;  %1847 = vmatmul.msk.f32.gmra.mxu0 %vm374_vm0, %v358_v6 }
  0xdd   : > { %676 = vmatmul.f32.gmra.mxu1 %v592_v8 }
  0xe0   : > { %v515_v9 = vpop.f32.mrf.mxu0 }
  0xe1   : > { %v516_v11 = vadd.f32 %v2332_v36, %v515_v9 }
  0xe3   : > { %v593_v12 = vmax.f32 %v516_v11, 0.0  ;;  %1848 = vmatmul.msk.f32.gmra.mxu0 %vm374_vm0, %v359_v10 }
  0xe5   : > { %679 = vmatmul.f32.gmra.mxu1 %v593_v12 }
  0xe8   : > { %v518_v13 = vpop.f32.mrf.mxu0 }
  0xe9   : > { %v519_v15 = vadd.f32 %v2332_v36, %v518_v13 }
  0xeb   : > { %v594_v16 = vmax.f32 %v519_v15, 0.0  ;;  %1849 = vmatmul.msk.f32.gmra.mxu0 %vm374_vm0, %v360_v14 }
  0xed   : > { %682 = vmatmul.f32.gmra.mxu1 %v594_v16 }
  0xf0   : > { %v521_v17 = vpop.f32.mrf.mxu0 }
  0xf1   : > { %v522_v19 = vadd.f32 %v2332_v36, %v521_v17 }
  0xf3   : > { %v595_v20 = vmax.f32 %v522_v19, 0.0  ;;  %1850 = vmatmul.msk.f32.gmra.mxu0 %vm374_vm0, %v361_v18 }
  0xf5   : > { %685 = vmatmul.f32.gmra.mxu1 %v595_v20 }
  0xf8   : > { %v524_v21 = vpop.f32.mrf.mxu0 }
  0xf9   : > { %v525_v23 = vadd.f32 %v2332_v36, %v524_v21 }
  0xfb   : > { %v596_v25 = vmax.f32 %v525_v23, 0.0  ;;  %1851 = vmatmul.msk.f32.gmra.mxu0 %vm374_vm0, %v362_v22 }
  0xfd   : > { %688 = vmatmul.f32.gmra.mxu1 %v596_v25 }
 0x100   : > { %v527_v27 = vpop.f32.mrf.mxu0 }
 0x101   : > { %v528_v29 = vadd.f32 %v2332_v36, %v527_v27  ;;  %v1012_v27 = vld [vmem:[%s2678_s7 + $0x78] sm:$0xff] }
 0x102   : > { %1017 = vmatpush.msra.mxu3 %v1012_v27 }
 0x103   : > { %v597_v30 = vmax.f32 %v528_v29, 0.0  ;;  %1852 = vmatmul.msk.f32.gmra.mxu0 %vm374_vm0, %v363_v28  ;;  %v1011_v28 = vld [vmem:[%s2678_s7 + $0x70] sm:$0xff] }
 0x104   : > { %1018 = vmatpush.msra.mxu3 %v1011_v28 }
 0x105   : > { %691 = vmatmul.f32.gmra.mxu1 %v597_v30 }
 0x108   : > { %v530_v31 = vpop.f32.mrf.mxu0 }
 0x109   : > { %v531_v33 = vadd.f32 %v2332_v36, %v530_v31  ;;  %v1010_v31 = vld [vmem:[%s2678_s7 + $0x68] sm:$0xff] }
 0x10a   : > { %1019 = vmatpush.msra.mxu3 %v1010_v31 }
 0x10b   : > { %v598_v34 = vmax.f32 %v531_v33, 0.0  ;;  %1853 = vmatmul.msk.f32.gmra.mxu0 %vm374_vm0, %v364_v32 }
 0x10d   : > { %694 = vmatmul.f32.gmra.mxu1 %v598_v34 }
 0x110   : > { %v533_v35 = vpop.f32.mrf.mxu0 }
 0x111   : > { %v534_v38 = vadd.f32 %v2332_v36, %v533_v35  ;;  %v1009_v35 = vld [vmem:[%s2678_s7 + $0x60] sm:$0xff] }
 0x112   : > { %1020 = vmatpush.msra.mxu3 %v1009_v35 }
 0x113   : > { %v599_v39 = vmax.f32 %v534_v38, 0.0  ;;  %1854 = vmatmul.msk.f32.gmra.mxu0 %vm374_vm0, %v365_v37  ;;  %v1008_v37 = vld [vmem:[%s2678_s7 + $0x58] sm:$0xff]  ;;  %v1007_v38 = vld [vmem:[%s2678_s7 + $0x50] sm:$0xff] }
 0x114   : > { %1021 = vmatpush.msra.mxu3 %v1008_v37 }
 0x115   : > { %697 = vmatmul.f32.gmra.mxu1 %v599_v39 }
 0x116   : > { %1022 = vmatpush.msra.mxu3 %v1007_v38 }
 0x118   : > { %v536_v41 = vpop.f32.mrf.mxu0 }
 0x119   : > { %v537_v42 = vadd.f32 %v2332_v36, %v536_v41 }
 0x11a   : > { %v653_v43 = vpop.f32.mrf.mxu1 }
 0x11b   : > { %v600_v44 = vmax.f32 %v537_v42, 0.0  ;;  %v654_v45 = vadd.f32 %v2391_v40, %v653_v43  ;;  %v1006_v42 = vld [vmem:[%s2678_s7 + $0x48] sm:$0xff] }
 0x11c   : > { %1023 = vmatpush.msra.mxu3 %v1006_v42 }
 0x11d   : > { %700 = vmatmul.f32.gmra.mxu1 %v600_v44  ;;  %1855 = vmatmul.msk.f32.vlgmr.msra.gmra.mxu2 %vm755_vm1, %v654_v45 }
 0x120   : > { %v539_v46 = vpop.f32.mrf.mxu0 }
 0x121   : > { %v540_v47 = vadd.f32 %v2332_v36, %v539_v46  ;;  %v1005_v46 = vld [vmem:[%s2678_s7 + $0x40] sm:$0xff] }
 0x122   : > { %v656_v48 = vpop.f32.mrf.mxu1  ;;  %1024 = vmatpush.msra.mxu3 %v1005_v46 }
 0x123   : > { %v601_v49 = vmax.f32 %v540_v47, 0.0  ;;  %v657_v50 = vadd.f32 %v2391_v40, %v656_v48  ;;  %v1004_v47 = vld [vmem:[%s2678_s7 + $0x38] sm:$0xff]  ;;  %v1003_v48 = vld [vmem:[%s2678_s7 + $0x30] sm:$0xff] }
 0x124   : > { %1025 = vmatpush.msra.mxu3 %v1004_v47 }
 0x125   : > { %703 = vmatmul.f32.gmra.mxu1 %v601_v49  ;;  %1856 = vmatmul.msk.f32.gmra.mxu2 %vm755_vm1, %v657_v50 }
 0x126   : > { %1026 = vmatpush.msra.mxu3 %v1003_v48 }
 0x128   : > { %v542_v51 = vpop.f32.mrf.mxu0 }
 0x129   : > { %v543_v52 = vadd.f32 %v2332_v36, %v542_v51  ;;  %v1002_v51 = vld [vmem:[%s2678_s7 + $0x28] sm:$0xff] }
 0x12a   : > { %v659_v53 = vpop.f32.mrf.mxu1  ;;  %1027 = vmatpush.msra.mxu3 %v1002_v51 }
 0x12b   : > { %v602_v54 = vmax.f32 %v543_v52, 0.0  ;;  %v660_v55 = vadd.f32 %v2391_v40, %v659_v53 }
 0x12d   : > { %706 = vmatmul.f32.gmra.mxu1 %v602_v54  ;;  %1857 = vmatmul.msk.f32.gmra.mxu2 %vm755_vm1, %v660_v55  ;;  %v1001_v55 = vld [vmem:[%s2678_s7 + $0x20] sm:$0xff] }
 0x12e   : > { %1028 = vmatpush.msra.mxu3 %v1001_v55 }
 0x130   : > { %v545_v56 = vpop.f32.mrf.mxu0 }
 0x131   : > { %v546_v57 = vadd.f32 %v2332_v36, %v545_v56  ;;  %v1000_v56 = vld [vmem:[%s2678_s7 + $0x18] sm:$0xff] }
 0x132   : > { %v662_v58 = vpop.f32.mrf.mxu1  ;;  %1029 = vmatpush.msra.mxu3 %v1000_v56 }
 0x133   : > { %v603_v59 = vmax.f32 %v546_v57, 0.0  ;;  %v663_v60 = vadd.f32 %v2391_v40, %v662_v58  ;;  %v999_v57 = vld [vmem:[%s2678_s7 + $0x10] sm:$0xff] }
 0x134   : > { %1030 = vmatpush.msra.mxu3 %v999_v57 }
 0x135   : > { %709 = vmatmul.f32.gmra.mxu1 %v603_v59  ;;  %1858 = vmatmul.msk.f32.gmra.mxu2 %vm755_vm1, %v663_v60  ;;  %v998_v60 = vld [vmem:[%s2678_s7 + $0x8] sm:$0xff] }
 0x136   : > { %1031 = vmatpush.msra.mxu3 %v998_v60 }
 0x138   : > { %v548_v61 = vpop.f32.mrf.mxu0 }
 0x139   : > { %v549_v62 = vadd.f32 %v2332_v36, %v548_v61 }
 0x13a   : > { %v665_v63 = vpop.f32.mrf.mxu1 }
 0x13b   : > { %v604_v0 = vmax.f32 %v549_v62, 0.0  ;;  %v666_v1 = vadd.f32 %v2391_v40, %v665_v63 }
 0x13d   : > { %712 = vmatmul.f32.gmra.mxu1 %v604_v0  ;;  %1859 = vmatmul.msk.f32.gmra.mxu2 %vm755_vm1, %v666_v1  ;;  %v997_v0 = vld [vmem:[%s2678_s7] sm:$0xff] }
 0x13e   : > { %1032 = vmatpush.msra.mxu3 %v997_v0 }
 0x140   : > { %v551_v2 = vpop.f32.mrf.mxu0 }
 0x141   : > { %v552_v3 = vadd.f32 %v2332_v36, %v551_v2 }
 0x142   : > { %v668_v4 = vpop.f32.mrf.mxu1 }
 0x143   : > { %v605_v5 = vmax.f32 %v552_v3, 0.0  ;;  %v669_v6 = vadd.f32 %v2391_v40, %v668_v4 }
 0x145   : > { %715 = vmatmul.f32.gmra.mxu1 %v605_v5  ;;  %1860 = vmatmul.msk.f32.gmra.mxu2 %vm755_vm1, %v669_v6 }
 0x148   : > { %v554_v7 = vpop.f32.mrf.mxu0 }
 0x149   : > { %v555_v8 = vadd.f32 %v2332_v36, %v554_v7 }
 0x14a   : > { %v671_v9 = vpop.f32.mrf.mxu1 }
 0x14b   : > { %v606_v10 = vmax.f32 %v555_v8, 0.0  ;;  %v672_v11 = vadd.f32 %v2391_v40, %v671_v9 }
 0x14d   : > { %718 = vmatmul.f32.gmra.mxu1 %v606_v10  ;;  %1861 = vmatmul.msk.f32.gmra.mxu2 %vm755_vm1, %v672_v11 }
 0x150   : > { %v557_v12 = vpop.f32.mrf.mxu0 }
 0x151   : > { %v558_v13 = vadd.f32 %v2332_v36, %v557_v12 }
 0x152   : > { %v674_v14 = vpop.f32.mrf.mxu1 }
 0x153   : > { %v607_v15 = vmax.f32 %v558_v13, 0.0  ;;  %v675_v16 = vadd.f32 %v2391_v40, %v674_v14  ;;  %v2494_v13 = vld [vmem:[%s2677_s6] ss:$0 sm:$0xff] }
 0x155   : > { %721 = vmatmul.f32.gmra.mxu1 %v607_v15  ;;  %1862 = vmatmul.msk.f32.gmra.mxu2 %vm755_vm1, %v675_v16 }
 0x158   : > { %v560_v17 = vpop.f32.mrf.mxu0 }
 0x159   : > { %v561_v18 = vadd.f32 %v2332_v36, %v560_v17 }
 0x15a   : > { %v677_v19 = vpop.f32.mrf.mxu1 }
 0x15b   : > { %v608_v20 = vmax.f32 %v561_v18, 0.0  ;;  %v678_v21 = vadd.f32 %v2391_v40, %v677_v19 }
 0x15d   : > { %724 = vmatmul.f32.gmra.mxu1 %v608_v20  ;;  %1863 = vmatmul.msk.f32.gmra.mxu2 %vm755_vm1, %v678_v21 }
 0x160   : > { %v563_v22 = vpop.f32.mrf.mxu0 }
 0x161   : > { %v564_v23 = vadd.f32 %v2332_v36, %v563_v22 }
 0x162   : > { %v680_v24 = vpop.f32.mrf.mxu1 }
 0x163   : > { %v609_v25 = vmax.f32 %v564_v23, 0.0  ;;  %v681_v26 = vadd.f32 %v2391_v40, %v680_v24 }
 0x165   : > { %727 = vmatmul.f32.gmra.mxu1 %v609_v25  ;;  %1864 = vmatmul.msk.f32.gmra.mxu2 %vm755_vm1, %v681_v26 }
 0x168   : > { %v566_v29 = vpop.f32.mrf.mxu0 }
 0x169   : > { %v567_v30 = vadd.f32 %v2332_v36, %v566_v29 }
 0x16a   : > { %v683_v32 = vpop.f32.mrf.mxu1 }
 0x16b   : > { %v610_v33 = vmax.f32 %v567_v30, 0.0  ;;  %v684_v34 = vadd.f32 %v2391_v40, %v683_v32 }
 0x16d   : > { %730 = vmatmul.f32.gmra.mxu1 %v610_v33  ;;  %1865 = vmatmul.msk.f32.gmra.mxu2 %vm755_vm1, %v684_v34 }
 0x170   : > { %v569_v39 = vpop.f32.mrf.mxu0 }
 0x171   : > { %v570_v41 = vadd.f32 %v2332_v36, %v569_v39 }
 0x172   : > { %v686_v43 = vpop.f32.mrf.mxu1 }
 0x173   : > { %v611_v44 = vmax.f32 %v570_v41, 0.0  ;;  %v687_v45 = vadd.f32 %v2391_v40, %v686_v43 }
 0x175   : > { %733 = vmatmul.f32.gmra.mxu1 %v611_v44  ;;  %1866 = vmatmul.msk.f32.gmra.mxu2 %vm755_vm1, %v687_v45 }
 0x178   : > { %v572_v49 = vpop.f32.mrf.mxu0 }
 0x179   : > { %v573_v50 = vadd.f32 %v2332_v36, %v572_v49 }
 0x17a   : > { %v689_v52 = vpop.f32.mrf.mxu1 }
 0x17b   : > { %v612_v53 = vmax.f32 %v573_v50, 0.0  ;;  %v690_v54 = vadd.f32 %v2391_v40, %v689_v52 }
 0x17d   : > { %736 = vmatmul.f32.gmra.mxu1 %v612_v53  ;;  %1867 = vmatmul.msk.f32.gmra.mxu2 %vm755_vm1, %v690_v54 }
 0x180   : > { %v575_v58 = vpop.f32.mrf.mxu0 }
 0x181   : > { %v576_v59 = vadd.f32 %v2332_v36, %v575_v58 }
 0x182   : > { %v692_v61 = vpop.f32.mrf.mxu1 }
 0x183   : > { %v613_v62 = vmax.f32 %v576_v59, 0.0  ;;  %v693_v63 = vadd.f32 %v2391_v40, %v692_v61 }
 0x185   : > { %739 = vmatmul.f32.gmra.mxu1 %v613_v62  ;;  %1868 = vmatmul.msk.f32.gmra.mxu2 %vm755_vm1, %v693_v63 }
 0x188   : > { %v578_v1 = vpop.f32.mrf.mxu0 }
 0x189   : > { %v579_v2 = vadd.f32 %v2332_v36, %v578_v1 }
 0x18a   : > { %v695_v3 = vpop.f32.mrf.mxu1 }
 0x18b   : > { %v614_v4 = vmax.f32 %v579_v2, 0.0  ;;  %v696_v5 = vadd.f32 %v2391_v40, %v695_v3 }
 0x18d   : > { %742 = vmatmul.f32.gmra.mxu1 %v614_v4  ;;  %1869 = vmatmul.msk.f32.gmra.mxu2 %vm755_vm1, %v696_v5 }
 0x190   : > { %v581_v6 = vpop.f32.mrf.mxu0 }
 0x191   : > { %v582_v7 = vadd.f32 %v2332_v36, %v581_v6 }
 0x192   : > { %v698_v8 = vpop.f32.mrf.mxu1 }
 0x193   : > { %v615_v9 = vmax.f32 %v582_v7, 0.0  ;;  %v699_v10 = vadd.f32 %v2391_v40, %v698_v8 }
 0x195   : > { %745 = vmatmul.f32.gmra.mxu1 %v615_v9  ;;  %1870 = vmatmul.msk.f32.gmra.mxu2 %vm755_vm1, %v699_v10 }
 0x19a   : > { %v701_v11 = vpop.f32.mrf.mxu1 }
 0x19b   : > { %v702_v12 = vadd.f32 %v2391_v40, %v701_v11 }
 0x19d   : > { %1871 = vmatmul.msk.f32.gmra.mxu2 %vm755_vm1, %v702_v12 }
 0x1a0   : > { %v869_v14 = vpop.f32.mrf.mxu2 }
 0x1a1   : > { %v870_v36 = vadd.f32 %v2494_v13, %v869_v14 }
 0x1a2   : > { %v704_v15 = vpop.f32.mrf.mxu1 }
 0x1a3   : > { %v705_v16 = vadd.f32 %v2391_v40, %v704_v15  ;;  %v965_v17 = vmax.f32 %v870_v36, 0.0 }
 0x1a5   : > { %1872 = vmatmul.msk.f32.gmra.mxu2 %vm755_vm1, %v705_v16  ;;  %1033 = vmatmul.f32.vlgmr.msra.gmra.mxu3 %v965_v17 }
 0x1a8   : > { %v872_v18 = vpop.f32.mrf.mxu2 }
 0x1a9   : > { %v873_v19 = vadd.f32 %v2494_v13, %v872_v18 }
 0x1aa   : > { %v707_v20 = vpop.f32.mrf.mxu1 }
 0x1ab   : > { %v708_v21 = vadd.f32 %v2391_v40, %v707_v20  ;;  %v966_v22 = vmax.f32 %v873_v19, 0.0 }
 0x1ad   : > { %1873 = vmatmul.msk.f32.gmra.mxu2 %vm755_vm1, %v708_v21  ;;  %1036 = vmatmul.f32.gmra.mxu3 %v966_v22 }
 0x1b0   : > { %v875_v23 = vpop.f32.mrf.mxu2 }
 0x1b1   : > { %v876_v24 = vadd.f32 %v2494_v13, %v875_v23 }
 0x1b2   : > { %v710_v25 = vpop.f32.mrf.mxu1 }
 0x1b3   : > { %v711_v26 = vadd.f32 %v2391_v40, %v710_v25  ;;  %v967_v27 = vmax.f32 %v876_v24, 0.0 }
 0x1b5   : > { %1874 = vmatmul.msk.f32.gmra.mxu2 %vm755_vm1, %v711_v26  ;;  %1039 = vmatmul.f32.gmra.mxu3 %v967_v27 }
 0x1b8   : > { %v878_v28 = vpop.f32.mrf.mxu2 }
 0x1b9   : > { %v879_v29 = vadd.f32 %v2494_v13, %v878_v28 }
 0x1ba   : > { %v713_v30 = vpop.f32.mrf.mxu1 }
 0x1bb   : > { %v714_v31 = vadd.f32 %v2391_v40, %v713_v30  ;;  %v968_v32 = vmax.f32 %v879_v29, 0.0 }
 0x1bd   : > { %1875 = vmatmul.msk.f32.gmra.mxu2 %vm755_vm1, %v714_v31  ;;  %1042 = vmatmul.f32.gmra.mxu3 %v968_v32  ;;  %v2546_v32 = vld [vmem:[%s2679_s8] ss:$0 sm:$0xff] }
 0x1c0   : > { %v881_v33 = vpop.f32.mrf.mxu2 }
 0x1c1   : > { %v882_v34 = vadd.f32 %v2494_v13, %v881_v33 }
 0x1c2   : > { %v716_v35 = vpop.f32.mrf.mxu1 }
 0x1c3   : > { %v717_v37 = vadd.f32 %v2391_v40, %v716_v35  ;;  %v969_v38 = vmax.f32 %v882_v34, 0.0 }
 0x1c5   : > { %1876 = vmatmul.msk.f32.gmra.mxu2 %vm755_vm1, %v717_v37  ;;  %1045 = vmatmul.f32.gmra.mxu3 %v969_v38 }
 0x1c8   : > { %v884_v39 = vpop.f32.mrf.mxu2 }
 0x1c9   : > { %v885_v41 = vadd.f32 %v2494_v13, %v884_v39 }
 0x1ca   : > { %v719_v42 = vpop.f32.mrf.mxu1 }
 0x1cb   : > { %v720_v43 = vadd.f32 %v2391_v40, %v719_v42  ;;  %v970_v44 = vmax.f32 %v885_v41, 0.0 }
 0x1cd   : > { %1877 = vmatmul.msk.f32.gmra.mxu2 %vm755_vm1, %v720_v43  ;;  %1048 = vmatmul.f32.gmra.mxu3 %v970_v44 }
 0x1d0   : > { %v887_v45 = vpop.f32.mrf.mxu2 }
 0x1d1   : > { %v888_v46 = vadd.f32 %v2494_v13, %v887_v45 }
 0x1d2   : > { %v722_v47 = vpop.f32.mrf.mxu1 }
 0x1d3   : > { %v723_v48 = vadd.f32 %v2391_v40, %v722_v47  ;;  %v971_v49 = vmax.f32 %v888_v46, 0.0 }
 0x1d5   : > { %1878 = vmatmul.msk.f32.gmra.mxu2 %vm755_vm1, %v723_v48  ;;  %1051 = vmatmul.f32.gmra.mxu3 %v971_v49 }
 0x1d8   : > { %v890_v50 = vpop.f32.mrf.mxu2 }
 0x1d9   : > { %v891_v51 = vadd.f32 %v2494_v13, %v890_v50 }
 0x1da   : > { %v725_v52 = vpop.f32.mrf.mxu1 }
 0x1db   : > { %v726_v53 = vadd.f32 %v2391_v40, %v725_v52  ;;  %v972_v54 = vmax.f32 %v891_v51, 0.0 }
 0x1dd   : > { %1879 = vmatmul.msk.f32.gmra.mxu2 %vm755_vm1, %v726_v53  ;;  %1054 = vmatmul.f32.gmra.mxu3 %v972_v54 }
 0x1e0   : > { %v893_v55 = vpop.f32.mrf.mxu2 }
 0x1e1   : > { %v894_v56 = vadd.f32 %v2494_v13, %v893_v55 }
 0x1e2   : > { %v728_v57 = vpop.f32.mrf.mxu1 }
 0x1e3   : > { %v973_v58 = vmax.f32 %v894_v56, 0.0  ;;  %v729_v59 = vadd.f32 %v2391_v40, %v728_v57 }
 0x1e5   : > { %1880 = vmatmul.msk.f32.gmra.mxu2 %vm755_vm1, %v729_v59  ;;  %1057 = vmatmul.f32.gmra.mxu3 %v973_v58 }
 0x1e8   : > { %v896_v60 = vpop.f32.mrf.mxu2 }
 0x1e9   : > { %v897_v61 = vadd.f32 %v2494_v13, %v896_v60 }
 0x1ea   : > { %v731_v62 = vpop.f32.mrf.mxu1 }
 0x1eb   : > { %v974_v63 = vmax.f32 %v897_v61, 0.0  ;;  %v732_v0 = vadd.f32 %v2391_v40, %v731_v62 }
 0x1ed   : > { %1881 = vmatmul.msk.f32.gmra.mxu2 %vm755_vm1, %v732_v0  ;;  %1060 = vmatmul.f32.gmra.mxu3 %v974_v63 }
 0x1f0   : > { %v899_v1 = vpop.f32.mrf.mxu2 }
 0x1f1   : > { %v900_v2 = vadd.f32 %v2494_v13, %v899_v1 }
 0x1f2   : > { %v734_v3 = vpop.f32.mrf.mxu1 }
 0x1f3   : > { %v975_v4 = vmax.f32 %v900_v2, 0.0  ;;  %v735_v5 = vadd.f32 %v2391_v40, %v734_v3 }
 0x1f5   : > { %1882 = vmatmul.msk.f32.gmra.mxu2 %vm755_vm1, %v735_v5  ;;  %1063 = vmatmul.f32.gmra.mxu3 %v975_v4 }
 0x1f8   : > { %v902_v6 = vpop.f32.mrf.mxu2 }
 0x1f9   : > { %v903_v7 = vadd.f32 %v2494_v13, %v902_v6 }
 0x1fa   : > { %v737_v8 = vpop.f32.mrf.mxu1 }
 0x1fb   : > { %v976_v9 = vmax.f32 %v903_v7, 0.0  ;;  %v738_v10 = vadd.f32 %v2391_v40, %v737_v8 }
 0x1fd   : > { %1883 = vmatmul.msk.f32.gmra.mxu2 %vm755_vm1, %v738_v10  ;;  %1066 = vmatmul.f32.gmra.mxu3 %v976_v9 }
 0x200   : > { %v905_v11 = vpop.f32.mrf.mxu2 }
 0x201   : > { %v906_v12 = vadd.f32 %v2494_v13, %v905_v11 }
 0x202   : > { %v740_v14 = vpop.f32.mrf.mxu1 }
 0x203   : > { %v977_v36 = vmax.f32 %v906_v12, 0.0  ;;  %v741_v15 = vadd.f32 %v2391_v40, %v740_v14 }
 0x205   : > { %1884 = vmatmul.msk.f32.gmra.mxu2 %vm755_vm1, %v741_v15  ;;  %1069 = vmatmul.f32.gmra.mxu3 %v977_v36 }
 0x208   : > { %v908_v16 = vpop.f32.mrf.mxu2 }
 0x209   : > { %v909_v17 = vadd.f32 %v2494_v13, %v908_v16 }
 0x20a   : > { %v743_v18 = vpop.f32.mrf.mxu1 }
 0x20b   : > { %v978_v19 = vmax.f32 %v909_v17, 0.0  ;;  %v744_v20 = vadd.f32 %v2391_v40, %v743_v18 }
 0x20d   : > { %1885 = vmatmul.msk.f32.gmra.mxu2 %vm755_vm1, %v744_v20  ;;  %1072 = vmatmul.f32.gmra.mxu3 %v978_v19 }
 0x210   : > { %v911_v21 = vpop.f32.mrf.mxu2 }
 0x211   : > { %v912_v22 = vadd.f32 %v2494_v13, %v911_v21 }
 0x212   : > { %v746_v23 = vpop.f32.mrf.mxu1 }
 0x213   : > { %v979_v24 = vmax.f32 %v912_v22, 0.0  ;;  %v747_v25 = vadd.f32 %v2391_v40, %v746_v23 }
 0x215   : > { %1886 = vmatmul.msk.f32.gmra.mxu2 %vm755_vm1, %v747_v25  ;;  %1075 = vmatmul.f32.gmra.mxu3 %v979_v24 }
 0x218   : > { %v914_v26 = vpop.f32.mrf.mxu2 }
 0x219   : > { %v915_v27 = vadd.f32 %v2494_v13, %v914_v26 }
 0x21b   : > { %v980_v28 = vmax.f32 %v915_v27, 0.0 }
 0x21d   : > { %1078 = vmatmul.f32.gmra.mxu3 %v980_v28 }
 0x220   : > { %v917_v29 = vpop.f32.mrf.mxu2 }
 0x221   : > { %v918_v30 = vadd.f32 %v2494_v13, %v917_v29 }
 0x223   : > { %v981_v31 = vmax.f32 %v918_v30, 0.0 }
 0x225   : > { %1081 = vmatmul.f32.gmra.mxu3 %v981_v31 }
 0x228   : > { %v920_v33 = vpop.f32.mrf.mxu2  ;;  %v1034_v40 = vpop.f32.mrf.mxu3 }
 0x229   : > { %v921_v34 = vadd.f32 %v2494_v13, %v920_v33  ;;  %v1035_v35 = vadd.f32 %v2546_v32, %v1034_v40 }
 0x22b   : > { %v982_v37 = vmax.f32 %v921_v34, 0.0  ;;  %v1130_v38 = vsub.f32 0.0, %v1035_v35 }
 0x22d   : > { %v1162_v39 = vmul.f32 1.442695, %v1130_v38  ;;  %1084 = vmatmul.f32.gmra.mxu3 %v982_v37 }
 0x22f   : > { %1938 = vpow2.f32 %v1162_v39 }
 0x230   : > { %v923_v41 = vpop.f32.mrf.mxu2  ;;  %v1037_v42 = vpop.f32.mrf.mxu3 }
 0x231   : > { %v924_v43 = vadd.f32 %v2494_v13, %v923_v41  ;;  %v1038_v44 = vadd.f32 %v2546_v32, %v1037_v42 }
 0x233   : > { %v983_v45 = vmax.f32 %v924_v43, 0.0  ;;  %v1131_v46 = vsub.f32 0.0, %v1038_v44 }
 0x235   : > { %v1939_v47 = vpop.eup %1938  ;;  %v1164_v48 = vmul.f32 1.442695, %v1131_v46  ;;  %1087 = vmatmul.f32.gmra.mxu3 %v983_v45 }
 0x236   : > { %v1226_v49 = vadd.f32 1.0, %v1939_v47 }
 0x237   : > { %1940 = vpow2.f32 %v1164_v48 }
 0x238   : > { %1942 = vrcp.f32 %v1226_v49  ;;  %v926_v50 = vpop.f32.mrf.mxu2  ;;  %v1040_v51 = vpop.f32.mrf.mxu3  ;;  %v1267_v2 = vand.u32 2147483647, %v1226_v49  ;;  %v1269_v3 = vand.u32 2147483648, %v1226_v49  ;;  %vm1263_vm3 = vweird.f32 %v1226_v49 }
 0x239   : > { %v927_v52 = vadd.f32 %v2494_v13, %v926_v50  ;;  %v1041_v53 = vadd.f32 %v2546_v32, %v1040_v51 }
 0x23a   : > { %v1270_v11 = vor.u32 1.1754944e-38, %v1269_v3  ;;  %vm1268_vm5 = vcmp.eq.f32.partialorder %v1267_v2, 8.507059e+37 }
 0x23b   : > { %v984_v54 = vmax.f32 %v927_v52, 0.0  ;;  %v1132_v55 = vsub.f32 0.0, %v1041_v53 }
 0x23d   : > { %v1941_v56 = vpop.eup %1940  ;;  %v1166_v57 = vmul.f32 1.442695, %v1132_v55  ;;  %1090 = vmatmul.f32.gmra.mxu3 %v984_v54 }
 0x23e   : > { %v1943_v58 = vpop.eup %1942  ;;  %v1227_v59 = vadd.f32 1.0, %v1941_v56 }
 0x23f   : > { %v1259_v60 = vmul.f32 %v1943_v58, %v1226_v49  ;;  %1944 = vpow2.f32 %v1166_v57  ;;  %vm1264_vm2 = vweird.f32 %v1943_v58 }
 0x240   : > { %1946 = vrcp.f32 %v1227_v59  ;;  %v929_v61 = vpop.f32.mrf.mxu2  ;;  %v1043_v62 = vpop.f32.mrf.mxu3  ;;  %vm1265_vm4 = vmor %vm1263_vm3, %vm1264_vm2  ;;  %v1281_v21 = vand.u32 2147483647, %v1227_v59  ;;  %v1283_v22 = vand.u32 2147483648, %v1227_v59  ;;  %vm1277_vm7 = vweird.f32 %v1227_v59 }
 0x241   : > { %v1260_v63 = vsub.f32 1.0, %v1259_v60  ;;  %v930_v0 = vadd.f32 %v2494_v13, %v929_v61  ;;  %v1044_v1 = vadd.f32 %v2546_v32, %v1043_v62 }
 0x242   : > { %v1284_v30 = vor.u32 1.1754944e-38, %v1283_v22  ;;  %vm1282_vm9 = vcmp.eq.f32.partialorder %v1281_v21, 8.507059e+37 }
 0x243   : > { %v1261_v4 = vmul.f32 %v1943_v58, %v1260_v63  ;;  %v985_v5 = vmax.f32 %v930_v0, 0.0  ;;  %v1133_v6 = vsub.f32 0.0, %v1044_v1 }
 0x245   : > { %v1945_v7 = vpop.eup %1944  ;;  %v1262_v8 = vadd.f32 %v1943_v58, %v1261_v4  ;;  %v1168_v9 = vmul.f32 1.442695, %v1133_v6  ;;  %1093 = vmatmul.f32.gmra.mxu3 %v985_v5 }
 0x246   : > { %v1947_v10 = vpop.eup %1946  ;;  %v1228_v12 = vadd.f32 1.0, %v1945_v7 }
 0x247   : > { %v1266_v14 = vsel %vm1265_vm4, %v1943_v58, %v1262_v8  ;;  %v1273_v36 = vmul.f32 %v1947_v10, %v1227_v59  ;;  %1948 = vpow2.f32 %v1168_v9  ;;  %vm1278_vm6 = vweird.f32 %v1947_v10 }
 0x248   : > { %v1271_v15 = vsel %vm1268_vm5, %v1270_v11, %v1266_v14  ;;  %1950 = vrcp.f32 %v1228_v12  ;;  %v932_v16 = vpop.f32.mrf.mxu2  ;;  %v1046_v17 = vpop.f32.mrf.mxu3  ;;  %vm1279_vm8 = vmor %vm1277_vm7, %vm1278_vm6  ;;  %v1295_v42 = vand.u32 2147483647, %v1228_v12  ;;  %v1297_v43 = vand.u32 2147483648, %v1228_v12 }
 0x249   : > { %1706 = vst [vmem:[%s2559_s14] sm:$0xff] %v1271_v15  ;;  %v1274_v18 = vsub.f32 1.0, %v1273_v36  ;;  %v933_v19 = vadd.f32 %v2494_v13, %v932_v16  ;;  %v1047_v20 = vadd.f32 %v2546_v32, %v1046_v17  ;;  %vm1291_vm11 = vweird.f32 %v1228_v12 }
 0x24a   : > { %v1298_v51 = vor.u32 1.1754944e-38, %v1297_v43  ;;  %vm1296_vm13 = vcmp.eq.f32.partialorder %v1295_v42, 8.507059e+37 }
 0x24b   : > { %v1275_v23 = vmul.f32 %v1947_v10, %v1274_v18  ;;  %v986_v24 = vmax.f32 %v933_v19, 0.0  ;;  %v1134_v25 = vsub.f32 0.0, %v1047_v20 }
 0x24d   : > { %v1949_v26 = vpop.eup %1948  ;;  %v1276_v27 = vadd.f32 %v1947_v10, %v1275_v23  ;;  %v1170_v28 = vmul.f32 1.442695, %v1134_v25  ;;  %1096 = vmatmul.f32.gmra.mxu3 %v986_v24 }
 0x24e   : > { %v1951_v29 = vpop.eup %1950  ;;  %v1229_v31 = vadd.f32 1.0, %v1949_v26 }
 0x24f   : > { %v1280_v33 = vsel %vm1279_vm8, %v1947_v10, %v1276_v27  ;;  %v1287_v40 = vmul.f32 %v1951_v29, %v1228_v12  ;;  %1952 = vpow2.f32 %v1170_v28  ;;  %vm1292_vm10 = vweird.f32 %v1951_v29 }
 0x250   : > { %v1285_v34 = vsel %vm1282_vm9, %v1284_v30, %v1280_v33  ;;  %1954 = vrcp.f32 %v1229_v31  ;;  %v935_v35 = vpop.f32.mrf.mxu2  ;;  %v1049_v37 = vpop.f32.mrf.mxu3  ;;  %vm1293_vm12 = vmor %vm1291_vm11, %vm1292_vm10  ;;  %v1309_v61 = vand.u32 2147483647, %v1229_v31  ;;  %v1311_v62 = vand.u32 2147483648, %v1229_v31 }
 0x251   : > { %1707 = vst [vmem:[%s2559_s14 + $0x8] sm:$0xff] %v1285_v34  ;;  %v1288_v38 = vsub.f32 1.0, %v1287_v40  ;;  %v936_v39 = vadd.f32 %v2494_v13, %v935_v35  ;;  %v1050_v41 = vadd.f32 %v2546_v32, %v1049_v37  ;;  %vm1305_vm15 = vweird.f32 %v1229_v31 }
 0x252   : > { %v1312_v6 = vor.u32 1.1754944e-38, %v1311_v62  ;;  %vm1310_vm1 = vcmp.eq.f32.partialorder %v1309_v61, 8.507059e+37 }
 0x253   : > { %v1289_v44 = vmul.f32 %v1951_v29, %v1288_v38  ;;  %v987_v45 = vmax.f32 %v936_v39, 0.0  ;;  %v1135_v46 = vsub.f32 0.0, %v1050_v41 }
 0x255   : > { %v1953_v47 = vpop.eup %1952  ;;  %v1290_v48 = vadd.f32 %v1951_v29, %v1289_v44  ;;  %v1172_v49 = vmul.f32 1.442695, %v1135_v46  ;;  %1099 = vmatmul.f32.gmra.mxu3 %v987_v45 }
 0x256   : > { %v1955_v50 = vpop.eup %1954  ;;  %v1230_v52 = vadd.f32 1.0, %v1953_v47 }
 0x257   : > { %v1294_v53 = vsel %vm1293_vm12, %v1951_v29, %v1290_v48  ;;  %v1301_v54 = vmul.f32 %v1955_v50, %v1229_v31  ;;  %1956 = vpow2.f32 %v1172_v49  ;;  %vm1306_vm14 = vweird.f32 %v1955_v50 }
 0x258   : > { %v1299_v55 = vsel %vm1296_vm13, %v1298_v51, %v1294_v53  ;;  %1958 = vrcp.f32 %v1230_v52  ;;  %v938_v56 = vpop.f32.mrf.mxu2  ;;  %v1052_v57 = vpop.f32.mrf.mxu3  ;;  %vm1307_vm0 = vmor %vm1305_vm15, %vm1306_vm14  ;;  %v1323_v16 = vand.u32 2147483647, %v1230_v52  ;;  %v1325_v17 = vand.u32 2147483648, %v1230_v52 }
 0x259   : > { %1708 = vst [vmem:[%s2559_s14 + $0x10] sm:$0xff] %v1299_v55  ;;  %v1302_v58 = vsub.f32 1.0, %v1301_v54  ;;  %v939_v59 = vadd.f32 %v2494_v13, %v938_v56  ;;  %v1053_v60 = vadd.f32 %v2546_v32, %v1052_v57  ;;  %vm1319_vm3 = vweird.f32 %v1230_v52 }
 0x25a   : > { %v1326_v25 = vor.u32 1.1754944e-38, %v1325_v17  ;;  %vm1324_vm5 = vcmp.eq.f32.partialorder %v1323_v16, 8.507059e+37 }
 0x25b   : > { %v1303_v63 = vmul.f32 %v1955_v50, %v1302_v58  ;;  %v988_v0 = vmax.f32 %v939_v59, 0.0  ;;  %v1136_v1 = vsub.f32 0.0, %v1053_v60 }
 0x25d   : > { %v1957_v2 = vpop.eup %1956  ;;  %v1304_v3 = vadd.f32 %v1955_v50, %v1303_v63  ;;  %v1174_v4 = vmul.f32 1.442695, %v1136_v1  ;;  %1102 = vmatmul.f32.gmra.mxu3 %v988_v0 }
 0x25e   : > { %v1959_v5 = vpop.eup %1958  ;;  %v1231_v7 = vadd.f32 1.0, %v1957_v2 }
 0x25f   : > { %v1308_v8 = vsel %vm1307_vm0, %v1955_v50, %v1304_v3  ;;  %v1315_v9 = vmul.f32 %v1959_v5, %v1230_v52  ;;  %1960 = vpow2.f32 %v1174_v4  ;;  %vm1320_vm2 = vweird.f32 %v1959_v5 }
 0x260   : > { %v1313_v10 = vsel %vm1310_vm1, %v1312_v6, %v1308_v8  ;;  %1962 = vrcp.f32 %v1231_v7  ;;  %v941_v11 = vpop.f32.mrf.mxu2  ;;  %v1055_v12 = vpop.f32.mrf.mxu3  ;;  %vm1321_vm4 = vmor %vm1319_vm3, %vm1320_vm2  ;;  %v1337_v35 = vand.u32 2147483647, %v1231_v7  ;;  %v1339_v37 = vand.u32 2147483648, %v1231_v7 }
 0x261   : > { %1709 = vst [vmem:[%s2559_s14 + $0x18] sm:$0xff] %v1313_v10  ;;  %v1316_v14 = vsub.f32 1.0, %v1315_v9  ;;  %v942_v36 = vadd.f32 %v2494_v13, %v941_v11  ;;  %v1056_v15 = vadd.f32 %v2546_v32, %v1055_v12  ;;  %vm1333_vm7 = vweird.f32 %v1231_v7 }
 0x262   : > { %v1340_v46 = vor.u32 1.1754944e-38, %v1339_v37  ;;  %vm1338_vm9 = vcmp.eq.f32.partialorder %v1337_v35, 8.507059e+37 }
 0x263   : > { %v1317_v18 = vmul.f32 %v1959_v5, %v1316_v14  ;;  %v989_v19 = vmax.f32 %v942_v36, 0.0  ;;  %v1137_v20 = vsub.f32 0.0, %v1056_v15 }
 0x265   : > { %v1961_v21 = vpop.eup %1960  ;;  %v1318_v22 = vadd.f32 %v1959_v5, %v1317_v18  ;;  %v1176_v23 = vmul.f32 1.442695, %v1137_v20  ;;  %1105 = vmatmul.f32.gmra.mxu3 %v989_v19 }
 0x266   : > { %v1963_v24 = vpop.eup %1962  ;;  %v1232_v26 = vadd.f32 1.0, %v1961_v21 }
 0x267   : > { %v1322_v27 = vsel %vm1321_vm4, %v1959_v5, %v1318_v22  ;;  %v1329_v28 = vmul.f32 %v1963_v24, %v1231_v7  ;;  %1964 = vpow2.f32 %v1176_v23  ;;  %vm1334_vm6 = vweird.f32 %v1963_v24 }
 0x268   : > { %v1327_v29 = vsel %vm1324_vm5, %v1326_v25, %v1322_v27  ;;  %1966 = vrcp.f32 %v1232_v26  ;;  %v944_v30 = vpop.f32.mrf.mxu2  ;;  %v1058_v31 = vpop.f32.mrf.mxu3  ;;  %vm1335_vm8 = vmor %vm1333_vm7, %vm1334_vm6  ;;  %v1351_v56 = vand.u32 2147483647, %v1232_v26  ;;  %v1353_v57 = vand.u32 2147483648, %v1232_v26 }
 0x269   : > { %1710 = vst [vmem:[%s2559_s14 + $0x20] sm:$0xff] %v1327_v29  ;;  %v1330_v33 = vsub.f32 1.0, %v1329_v28  ;;  %v945_v40 = vadd.f32 %v2494_v13, %v944_v30  ;;  %v1059_v34 = vadd.f32 %v2546_v32, %v1058_v31  ;;  %vm1347_vm11 = vweird.f32 %v1232_v26 }
 0x26a   : > { %v1354_v1 = vor.u32 1.1754944e-38, %v1353_v57  ;;  %vm1352_vm13 = vcmp.eq.f32.partialorder %v1351_v56, 8.507059e+37 }
 0x26b   : > { %v1331_v38 = vmul.f32 %v1963_v24, %v1330_v33  ;;  %v990_v39 = vmax.f32 %v945_v40, 0.0  ;;  %v1138_v41 = vsub.f32 0.0, %v1059_v34 }
 0x26d   : > { %v1965_v42 = vpop.eup %1964  ;;  %v1332_v43 = vadd.f32 %v1963_v24, %v1331_v38  ;;  %v1178_v44 = vmul.f32 1.442695, %v1138_v41  ;;  %1108 = vmatmul.f32.gmra.mxu3 %v990_v39 }
 0x26e   : > { %v1967_v45 = vpop.eup %1966  ;;  %v1233_v47 = vadd.f32 1.0, %v1965_v42 }
 0x26f   : > { %v1336_v48 = vsel %vm1335_vm8, %v1963_v24, %v1332_v43  ;;  %v1343_v49 = vmul.f32 %v1967_v45, %v1232_v26  ;;  %1968 = vpow2.f32 %v1178_v44  ;;  %vm1348_vm10 = vweird.f32 %v1967_v45 }
 0x270   : > { %v1341_v50 = vsel %vm1338_vm9, %v1340_v46, %v1336_v48  ;;  %1970 = vrcp.f32 %v1233_v47  ;;  %v947_v51 = vpop.f32.mrf.mxu2  ;;  %v1061_v52 = vpop.f32.mrf.mxu3  ;;  %vm1349_vm12 = vmor %vm1347_vm11, %vm1348_vm10  ;;  %v1365_v11 = vand.u32 2147483647, %v1233_v47  ;;  %v1367_v12 = vand.u32 2147483648, %v1233_v47 }
 0x271   : > { %1711 = vst [vmem:[%s2559_s14 + $0x28] sm:$0xff] %v1341_v50  ;;  %v1344_v53 = vsub.f32 1.0, %v1343_v49  ;;  %v948_v54 = vadd.f32 %v2494_v13, %v947_v51  ;;  %v1062_v55 = vadd.f32 %v2546_v32, %v1061_v52  ;;  %vm1361_vm15 = vweird.f32 %v1233_v47 }
 0x272   : > { %v1368_v20 = vor.u32 1.1754944e-38, %v1367_v12  ;;  %vm1366_vm1 = vcmp.eq.f32.partialorder %v1365_v11, 8.507059e+37 }
 0x273   : > { %v1345_v58 = vmul.f32 %v1967_v45, %v1344_v53  ;;  %v991_v59 = vmax.f32 %v948_v54, 0.0  ;;  %v1139_v60 = vsub.f32 0.0, %v1062_v55 }
 0x275   : > { %v1969_v61 = vpop.eup %1968  ;;  %v1346_v62 = vadd.f32 %v1967_v45, %v1345_v58  ;;  %v1180_v63 = vmul.f32 1.442695, %v1139_v60  ;;  %1111 = vmatmul.f32.gmra.mxu3 %v991_v59 }
 0x276   : > { %v1971_v0 = vpop.eup %1970  ;;  %v1234_v2 = vadd.f32 1.0, %v1969_v61 }
 0x277   : > { %v1350_v3 = vsel %vm1349_vm12, %v1967_v45, %v1346_v62  ;;  %v1357_v4 = vmul.f32 %v1971_v0, %v1233_v47  ;;  %1972 = vpow2.f32 %v1180_v63  ;;  %vm1362_vm14 = vweird.f32 %v1971_v0 }
 0x278   : > { %v1355_v5 = vsel %vm1352_vm13, %v1354_v1, %v1350_v3  ;;  %1974 = vrcp.f32 %v1234_v2  ;;  %v950_v6 = vpop.f32.mrf.mxu2  ;;  %v1064_v7 = vpop.f32.mrf.mxu3  ;;  %vm1363_vm0 = vmor %vm1361_vm15, %vm1362_vm14  ;;  %v1379_v30 = vand.u32 2147483647, %v1234_v2  ;;  %v1381_v31 = vand.u32 2147483648, %v1234_v2 }
 0x279   : > { %1712 = vst [vmem:[%s2559_s14 + $0x30] sm:$0xff] %v1355_v5  ;;  %v1358_v8 = vsub.f32 1.0, %v1357_v4  ;;  %v951_v9 = vadd.f32 %v2494_v13, %v950_v6  ;;  %v1065_v10 = vadd.f32 %v2546_v32, %v1064_v7  ;;  %vm1375_vm3 = vweird.f32 %v1234_v2 }
 0x27a   : > { %v1382_v41 = vor.u32 1.1754944e-38, %v1381_v31  ;;  %vm1380_vm5 = vcmp.eq.f32.partialorder %v1379_v30, 8.507059e+37 }
 0x27b   : > { %v1359_v14 = vmul.f32 %v1971_v0, %v1358_v8  ;;  %v992_v36 = vmax.f32 %v951_v9, 0.0  ;;  %v1140_v15 = vsub.f32 0.0, %v1065_v10 }
 0x27d   : > { %v1973_v16 = vpop.eup %1972  ;;  %v1360_v17 = vadd.f32 %v1971_v0, %v1359_v14  ;;  %v1182_v18 = vmul.f32 1.442695, %v1140_v15  ;;  %1114 = vmatmul.f32.gmra.mxu3 %v992_v36 }
 0x27e   : > { %v1975_v19 = vpop.eup %1974  ;;  %v1235_v21 = vadd.f32 1.0, %v1973_v16 }
 0x27f   : > { %v1364_v22 = vsel %vm1363_vm0, %v1971_v0, %v1360_v17  ;;  %v1371_v23 = vmul.f32 %v1975_v19, %v1234_v2  ;;  %1976 = vpow2.f32 %v1182_v18  ;;  %vm1376_vm2 = vweird.f32 %v1975_v19 }
 0x280   : > { %v1369_v24 = vsel %vm1366_vm1, %v1368_v20, %v1364_v22  ;;  %1978 = vrcp.f32 %v1235_v21  ;;  %v953_v25 = vpop.f32.mrf.mxu2  ;;  %v1067_v26 = vpop.f32.mrf.mxu3  ;;  %vm1377_vm4 = vmor %vm1375_vm3, %vm1376_vm2  ;;  %v1393_v51 = vand.u32 2147483647, %v1235_v21  ;;  %v1395_v52 = vand.u32 2147483648, %v1235_v21 }
 0x281   : > { %1713 = vst [vmem:[%s2559_s14 + $0x38] sm:$0xff] %v1369_v24  ;;  %v1372_v27 = vsub.f32 1.0, %v1371_v23  ;;  %v954_v28 = vadd.f32 %v2494_v13, %v953_v25  ;;  %v1068_v29 = vadd.f32 %v2546_v32, %v1067_v26  ;;  %vm1389_vm7 = vweird.f32 %v1235_v21 }
 0x282   : > { %v1396_v60 = vor.u32 1.1754944e-38, %v1395_v52  ;;  %vm1394_vm9 = vcmp.eq.f32.partialorder %v1393_v51, 8.507059e+37 }
 0x283   : > { %v1373_v33 = vmul.f32 %v1975_v19, %v1372_v27  ;;  %v993_v40 = vmax.f32 %v954_v28, 0.0  ;;  %v1141_v34 = vsub.f32 0.0, %v1068_v29 }
 0x285   : > { %v1977_v35 = vpop.eup %1976  ;;  %v1374_v37 = vadd.f32 %v1975_v19, %v1373_v33  ;;  %v1184_v38 = vmul.f32 1.442695, %v1141_v34  ;;  %1117 = vmatmul.f32.gmra.mxu3 %v993_v40 }
 0x286   : > { %v1979_v39 = vpop.eup %1978  ;;  %v1236_v42 = vadd.f32 1.0, %v1977_v35 }
 0x287   : > { %v1378_v43 = vsel %vm1377_vm4, %v1975_v19, %v1374_v37  ;;  %v1385_v44 = vmul.f32 %v1979_v39, %v1235_v21  ;;  %1980 = vpow2.f32 %v1184_v38  ;;  %vm1390_vm6 = vweird.f32 %v1979_v39 }
 0x288   : > { %v1383_v45 = vsel %vm1380_vm5, %v1382_v41, %v1378_v43  ;;  %1982 = vrcp.f32 %v1236_v42  ;;  %v956_v46 = vpop.f32.mrf.mxu2  ;;  %v1070_v47 = vpop.f32.mrf.mxu3  ;;  %vm1391_vm8 = vmor %vm1389_vm7, %vm1390_vm6  ;;  %v1407_v6 = vand.u32 2147483647, %v1236_v42  ;;  %v1409_v7 = vand.u32 2147483648, %v1236_v42 }
 0x289   : > { %1714 = vst [vmem:[%s2559_s14 + $0x40] sm:$0xff] %v1383_v45  ;;  %v1386_v48 = vsub.f32 1.0, %v1385_v44  ;;  %v957_v49 = vadd.f32 %v2494_v13, %v956_v46  ;;  %v1071_v50 = vadd.f32 %v2546_v32, %v1070_v47  ;;  %vm1403_vm11 = vweird.f32 %v1236_v42 }
 0x28a   : > { %v1410_v15 = vor.u32 1.1754944e-38, %v1409_v7  ;;  %vm1408_vm13 = vcmp.eq.f32.partialorder %v1407_v6, 8.507059e+37 }
 0x28b   : > { %v1387_v53 = vmul.f32 %v1979_v39, %v1386_v48  ;;  %v994_v54 = vmax.f32 %v957_v49, 0.0  ;;  %v1142_v55 = vsub.f32 0.0, %v1071_v50 }
 0x28d   : > { %v1981_v56 = vpop.eup %1980  ;;  %v1388_v57 = vadd.f32 %v1979_v39, %v1387_v53  ;;  %v1186_v58 = vmul.f32 1.442695, %v1142_v55  ;;  %1120 = vmatmul.f32.gmra.mxu3 %v994_v54 }
 0x28e   : > { %v1983_v59 = vpop.eup %1982  ;;  %v1237_v61 = vadd.f32 1.0, %v1981_v56 }
 0x28f   : > { %v1392_v62 = vsel %vm1391_vm8, %v1979_v39, %v1388_v57  ;;  %v1399_v63 = vmul.f32 %v1983_v59, %v1236_v42  ;;  %1984 = vpow2.f32 %v1186_v58  ;;  %vm1404_vm10 = vweird.f32 %v1983_v59 }
 0x290   : > { %v1397_v0 = vsel %vm1394_vm9, %v1396_v60, %v1392_v62  ;;  %1986 = vrcp.f32 %v1237_v61  ;;  %v959_v1 = vpop.f32.mrf.mxu2  ;;  %v1073_v2 = vpop.f32.mrf.mxu3  ;;  %vm1405_vm12 = vmor %vm1403_vm11, %vm1404_vm10  ;;  %v1421_v25 = vand.u32 2147483647, %v1237_v61  ;;  %v1423_v26 = vand.u32 2147483648, %v1237_v61 }
 0x291   : > { %1715 = vst [vmem:[%s2559_s14 + $0x48] sm:$0xff] %v1397_v0  ;;  %v1400_v3 = vsub.f32 1.0, %v1399_v63  ;;  %v960_v4 = vadd.f32 %v2494_v13, %v959_v1  ;;  %v1074_v5 = vadd.f32 %v2546_v32, %v1073_v2  ;;  %vm1417_vm15 = vweird.f32 %v1237_v61 }
 0x292   : > { %v1424_v34 = vor.u32 1.1754944e-38, %v1423_v26  ;;  %vm1422_vm1 = vcmp.eq.f32.partialorder %v1421_v25, 8.507059e+37 }
 0x293   : > { %v1401_v8 = vmul.f32 %v1983_v59, %v1400_v3  ;;  %v995_v9 = vmax.f32 %v960_v4, 0.0  ;;  %v1143_v10 = vsub.f32 0.0, %v1074_v5 }
 0x295   : > { %v1985_v11 = vpop.eup %1984  ;;  %v1402_v12 = vadd.f32 %v1983_v59, %v1401_v8  ;;  %v1188_v14 = vmul.f32 1.442695, %v1143_v10  ;;  %1123 = vmatmul.f32.gmra.mxu3 %v995_v9 }
 0x296   : > { %v1987_v36 = vpop.eup %1986  ;;  %v1238_v16 = vadd.f32 1.0, %v1985_v11 }
 0x297   : > { %v1406_v17 = vsel %vm1405_vm12, %v1983_v59, %v1402_v12  ;;  %v1413_v18 = vmul.f32 %v1987_v36, %v1237_v61  ;;  %1988 = vpow2.f32 %v1188_v14  ;;  %vm1418_vm14 = vweird.f32 %v1987_v36 }
 0x298   : > { %v1411_v19 = vsel %vm1408_vm13, %v1410_v15, %v1406_v17  ;;  %1990 = vrcp.f32 %v1238_v16  ;;  %v962_v20 = vpop.f32.mrf.mxu2  ;;  %v1076_v21 = vpop.f32.mrf.mxu3  ;;  %vm1419_vm0 = vmor %vm1417_vm15, %vm1418_vm14  ;;  %v1437_v43 = vand.u32 2147483648, %v1238_v16  ;;  %v1435_v45 = vand.u32 2147483647, %v1238_v16 }
 0x299   : > { %1716 = vst [vmem:[%s2559_s14 + $0x50] sm:$0xff] %v1411_v19  ;;  %v1414_v22 = vsub.f32 1.0, %v1413_v18  ;;  %v963_v23 = vadd.f32 %v2494_v13, %v962_v20  ;;  %v1077_v24 = vadd.f32 %v2546_v32, %v1076_v21  ;;  %vm1431_vm3 = vweird.f32 %v1238_v16 }
 0x29a   : > { %v1438_v51 = vor.u32 1.1754944e-38, %v1437_v43  ;;  %vm1436_vm5 = vcmp.eq.f32.partialorder %v1435_v45, 8.507059e+37 }
 0x29b   : > { %v1415_v27 = vmul.f32 %v1987_v36, %v1414_v22  ;;  %v996_v28 = vmax.f32 %v963_v23, 0.0  ;;  %v1144_v29 = vsub.f32 0.0, %v1077_v24 }
 0x29d   : > { %v1989_v30 = vpop.eup %1988  ;;  %v1416_v31 = vadd.f32 %v1987_v36, %v1415_v27  ;;  %v1190_v33 = vmul.f32 1.442695, %v1144_v29  ;;  %1126 = vmatmul.f32.gmra.mxu3 %v996_v28 }
 0x29e   : > { %v1991_v40 = vpop.eup %1990  ;;  %v1239_v35 = vadd.f32 1.0, %v1989_v30 }
 0x29f   : > { %v1420_v37 = vsel %vm1419_vm0, %v1987_v36, %v1416_v31  ;;  %v1427_v13 = vmul.f32 %v1991_v40, %v1238_v16  ;;  %1992 = vpow2.f32 %v1190_v33  ;;  %vm1432_vm2 = vweird.f32 %v1991_v40 }
 0x2a0   : > { %v1425_v38 = vsel %vm1422_vm1, %v1424_v34, %v1420_v37  ;;  %1994 = vrcp.f32 %v1239_v35  ;;  %v1079_v39 = vpop.f32.mrf.mxu3  ;;  %vm1433_vm4 = vmor %vm1431_vm3, %vm1432_vm2  ;;  %v1451_v59 = vand.u32 2147483648, %v1239_v35  ;;  %v1449_v61 = vand.u32 2147483647, %v1239_v35 }
 0x2a1   : > { %1717 = vst [vmem:[%s2559_s14 + $0x58] sm:$0xff] %v1425_v38  ;;  %v1428_v41 = vsub.f32 1.0, %v1427_v13  ;;  %v1080_v42 = vadd.f32 %v2546_v32, %v1079_v39  ;;  %vm1445_vm7 = vweird.f32 %v1239_v35 }
 0x2a2   : > { %v1452_v3 = vor.u32 1.1754944e-38, %v1451_v59  ;;  %vm1450_vm9 = vcmp.eq.f32.partialorder %v1449_v61, 8.507059e+37 }
 0x2a3   : > { %v1429_v44 = vmul.f32 %v1991_v40, %v1428_v41  ;;  %v1145_v46 = vsub.f32 0.0, %v1080_v42 }
 0x2a5   : > { %v1993_v47 = vpop.eup %1992  ;;  %v1430_v48 = vadd.f32 %v1991_v40, %v1429_v44  ;;  %v1192_v49 = vmul.f32 1.442695, %v1145_v46 }
 0x2a6   : > { %v1995_v50 = vpop.eup %1994  ;;  %v1240_v52 = vadd.f32 1.0, %v1993_v47 }
 0x2a7   : > { %v1434_v53 = vsel %vm1433_vm4, %v1991_v40, %v1430_v48  ;;  %v1441_v54 = vmul.f32 %v1995_v50, %v1239_v35  ;;  %1996 = vpow2.f32 %v1192_v49  ;;  %vm1446_vm6 = vweird.f32 %v1995_v50 }
 0x2a8   : > { %v1439_v55 = vsel %vm1436_vm5, %v1438_v51, %v1434_v53  ;;  %1998 = vrcp.f32 %v1240_v52  ;;  %v1082_v56 = vpop.f32.mrf.mxu3  ;;  %vm1447_vm8 = vmor %vm1445_vm7, %vm1446_vm6  ;;  %v1465_v11 = vand.u32 2147483648, %v1240_v52  ;;  %v1463_v14 = vand.u32 2147483647, %v1240_v52 }
 0x2a9   : > { %1718 = vst [vmem:[%s2559_s14 + $0x60] sm:$0xff] %v1439_v55  ;;  %v1442_v57 = vsub.f32 1.0, %v1441_v54  ;;  %v1083_v58 = vadd.f32 %v2546_v32, %v1082_v56  ;;  %vm1459_vm11 = vweird.f32 %v1240_v52 }
 0x2aa   : > { %v1466_v19 = vor.u32 1.1754944e-38, %v1465_v11  ;;  %vm1464_vm13 = vcmp.eq.f32.partialorder %v1463_v14, 8.507059e+37 }
 0x2ab   : > { %v1443_v60 = vmul.f32 %v1995_v50, %v1442_v57  ;;  %v1146_v62 = vsub.f32 0.0, %v1083_v58 }
 0x2ad   : > { %v1997_v63 = vpop.eup %1996  ;;  %v1444_v0 = vadd.f32 %v1995_v50, %v1443_v60  ;;  %v1194_v1 = vmul.f32 1.442695, %v1146_v62 }
 0x2ae   : > { %v1999_v2 = vpop.eup %1998  ;;  %v1241_v4 = vadd.f32 1.0, %v1997_v63 }
 0x2af   : > { %v1448_v5 = vsel %vm1447_vm8, %v1995_v50, %v1444_v0  ;;  %v1455_v6 = vmul.f32 %v1999_v2, %v1240_v52  ;;  %2000 = vpow2.f32 %v1194_v1  ;;  %vm1460_vm10 = vweird.f32 %v1999_v2 }
 0x2b0   : > { %v1453_v7 = vsel %vm1450_vm9, %v1452_v3, %v1448_v5  ;;  %2002 = vrcp.f32 %v1241_v4  ;;  %v1085_v8 = vpop.f32.mrf.mxu3  ;;  %vm1461_vm12 = vmor %vm1459_vm11, %vm1460_vm10  ;;  %v1479_v27 = vand.u32 2147483648, %v1241_v4  ;;  %v1477_v29 = vand.u32 2147483647, %v1241_v4 }
 0x2b1   : > { %1719 = vst [vmem:[%s2559_s14 + $0x68] sm:$0xff] %v1453_v7  ;;  %v1456_v9 = vsub.f32 1.0, %v1455_v6  ;;  %v1086_v10 = vadd.f32 %v2546_v32, %v1085_v8  ;;  %vm1473_vm15 = vweird.f32 %v1241_v4 }
 0x2b2   : > { %v1480_v35 = vor.u32 1.1754944e-38, %v1479_v27  ;;  %vm1478_vm1 = vcmp.eq.f32.partialorder %v1477_v29, 8.507059e+37 }
 0x2b3   : > { %v1457_v12 = vmul.f32 %v1999_v2, %v1456_v9  ;;  %v1147_v36 = vsub.f32 0.0, %v1086_v10 }
 0x2b5   : > { %v2001_v15 = vpop.eup %2000  ;;  %v1458_v16 = vadd.f32 %v1999_v2, %v1457_v12  ;;  %v1196_v17 = vmul.f32 1.442695, %v1147_v36 }
 0x2b6   : > { %v2003_v18 = vpop.eup %2002  ;;  %v1242_v20 = vadd.f32 1.0, %v2001_v15 }
 0x2b7   : > { %v1462_v21 = vsel %vm1461_vm12, %v1999_v2, %v1458_v16  ;;  %v1469_v22 = vmul.f32 %v2003_v18, %v1241_v4  ;;  %2004 = vpow2.f32 %v1196_v17  ;;  %vm1474_vm14 = vweird.f32 %v2003_v18 }
 0x2b8   : > { %v1467_v23 = vsel %vm1464_vm13, %v1466_v19, %v1462_v21  ;;  %2006 = vrcp.f32 %v1242_v20  ;;  %v1088_v24 = vpop.f32.mrf.mxu3  ;;  %vm1475_vm0 = vmor %vm1473_vm15, %vm1474_vm14  ;;  %v1493_v44 = vand.u32 2147483648, %v1242_v20  ;;  %v1491_v46 = vand.u32 2147483647, %v1242_v20 }
 0x2b9   : > { %1720 = vst [vmem:[%s2559_s14 + $0x70] sm:$0xff] %v1467_v23  ;;  %v1470_v25 = vsub.f32 1.0, %v1469_v22  ;;  %v1089_v26 = vadd.f32 %v2546_v32, %v1088_v24  ;;  %vm1487_vm3 = vweird.f32 %v1242_v20 }
 0x2ba   : > { %v1494_v52 = vor.u32 1.1754944e-38, %v1493_v44  ;;  %vm1492_vm5 = vcmp.eq.f32.partialorder %v1491_v46, 8.507059e+37 }
 0x2bb   : > { %v1471_v28 = vmul.f32 %v2003_v18, %v1470_v25  ;;  %v1148_v30 = vsub.f32 0.0, %v1089_v26  ;;  %v2612_v26 = vld [vmem:[%s2679_s8] ss:$0 sm:$0xff] }
 0x2bd   : > { %v2005_v31 = vpop.eup %2004  ;;  %v1472_v33 = vadd.f32 %v2003_v18, %v1471_v28  ;;  %v1198_v40 = vmul.f32 1.442695, %v1148_v30 }
 0x2be   : > { %v2007_v34 = vpop.eup %2006  ;;  %v1243_v37 = vadd.f32 1.0, %v2005_v31 }
 0x2bf   : > { %v1476_v13 = vsel %vm1475_vm0, %v2003_v18, %v1472_v33  ;;  %v1483_v38 = vmul.f32 %v2007_v34, %v1242_v20  ;;  %2008 = vpow2.f32 %v1198_v40  ;;  %vm1488_vm2 = vweird.f32 %v2007_v34 }
 0x2c0   : > { %v1481_v39 = vsel %vm1478_vm1, %v1480_v35, %v1476_v13  ;;  %2010 = vrcp.f32 %v1243_v37  ;;  %v1091_v41 = vpop.f32.mrf.mxu3  ;;  %vm1489_vm4 = vmor %vm1487_vm3, %vm1488_vm2  ;;  %v1507_v60 = vand.u32 2147483648, %v1243_v37  ;;  %v1505_v62 = vand.u32 2147483647, %v1243_v37 }
 0x2c1   : > { %1721 = vst [vmem:[%s2559_s14 + $0x78] sm:$0xff] %v1481_v39  ;;  %v1484_v42 = vsub.f32 1.0, %v1483_v38  ;;  %v1092_v43 = vadd.f32 %v2546_v32, %v1091_v41  ;;  %vm1501_vm7 = vweird.f32 %v1243_v37 }
 0x2c2   : > { %v1508_v4 = vor.u32 1.1754944e-38, %v1507_v60  ;;  %vm1506_vm9 = vcmp.eq.f32.partialorder %v1505_v62, 8.507059e+37 }
 0x2c3   : > { %v1485_v45 = vmul.f32 %v2007_v34, %v1484_v42  ;;  %v1149_v47 = vsub.f32 0.0, %v1092_v43 }
 0x2c5   : > { %v2009_v48 = vpop.eup %2008  ;;  %v1486_v49 = vadd.f32 %v2007_v34, %v1485_v45  ;;  %v1200_v50 = vmul.f32 1.442695, %v1149_v47 }
 0x2c6   : > { %v2011_v51 = vpop.eup %2010  ;;  %v1244_v53 = vadd.f32 1.0, %v2009_v48 }
 0x2c7   : > { %v1490_v54 = vsel %vm1489_vm4, %v2007_v34, %v1486_v49  ;;  %v1497_v55 = vmul.f32 %v2011_v51, %v1243_v37  ;;  %2012 = vpow2.f32 %v1200_v50  ;;  %vm1502_vm6 = vweird.f32 %v2011_v51 }
 0x2c8   : > { %v1495_v56 = vsel %vm1492_vm5, %v1494_v52, %v1490_v54  ;;  %2014 = vrcp.f32 %v1244_v53  ;;  %v1094_v57 = vpop.f32.mrf.mxu3  ;;  %vm1503_vm8 = vmor %vm1501_vm7, %vm1502_vm6  ;;  %v1521_v12 = vand.u32 2147483648, %v1244_v53  ;;  %v1519_v36 = vand.u32 2147483647, %v1244_v53 }
 0x2c9   : > { %1722 = vst [vmem:[%s2559_s14 + $0x80] sm:$0xff] %v1495_v56  ;;  %v1498_v58 = vsub.f32 1.0, %v1497_v55  ;;  %v1095_v59 = vadd.f32 %v2546_v32, %v1094_v57  ;;  %vm1515_vm11 = vweird.f32 %v1244_v53 }
 0x2ca   : > { %v1522_v20 = vor.u32 1.1754944e-38, %v1521_v12  ;;  %vm1520_vm13 = vcmp.eq.f32.partialorder %v1519_v36, 8.507059e+37 }
 0x2cb   : > { %v1499_v61 = vmul.f32 %v2011_v51, %v1498_v58  ;;  %v1150_v63 = vsub.f32 0.0, %v1095_v59 }
 0x2cd   : > { %v2013_v0 = vpop.eup %2012  ;;  %v1500_v1 = vadd.f32 %v2011_v51, %v1499_v61  ;;  %v1202_v2 = vmul.f32 1.442695, %v1150_v63 }
 0x2ce   : > { %v2015_v3 = vpop.eup %2014  ;;  %v1245_v5 = vadd.f32 1.0, %v2013_v0 }
 0x2cf   : > { %v1504_v6 = vsel %vm1503_vm8, %v2011_v51, %v1500_v1  ;;  %v1511_v7 = vmul.f32 %v2015_v3, %v1244_v53  ;;  %2016 = vpow2.f32 %v1202_v2  ;;  %vm1516_vm10 = vweird.f32 %v2015_v3 }
 0x2d0   : > { %v1509_v8 = vsel %vm1506_vm9, %v1508_v4, %v1504_v6  ;;  %2018 = vrcp.f32 %v1245_v5  ;;  %v1097_v9 = vpop.f32.mrf.mxu3  ;;  %vm1517_vm12 = vmor %vm1515_vm11, %vm1516_vm10  ;;  %v1535_v28 = vand.u32 2147483648, %v1245_v5  ;;  %v1533_v30 = vand.u32 2147483647, %v1245_v5 }
 0x2d1   : > { %1723 = vst [vmem:[%s2559_s14 + $0x88] sm:$0xff] %v1509_v8  ;;  %v1512_v10 = vsub.f32 1.0, %v1511_v7  ;;  %v1098_v11 = vadd.f32 %v2546_v32, %v1097_v9  ;;  %vm1529_vm15 = vweird.f32 %v1245_v5 }
 0x2d2   : > { %v1536_v37 = vor.u32 1.1754944e-38, %v1535_v28  ;;  %vm1534_vm1 = vcmp.eq.f32.partialorder %v1533_v30, 8.507059e+37 }
 0x2d3   : > { %v1513_v14 = vmul.f32 %v2015_v3, %v1512_v10  ;;  %v1151_v15 = vsub.f32 0.0, %v1098_v11 }
 0x2d5   : > { %v2017_v16 = vpop.eup %2016  ;;  %v1514_v17 = vadd.f32 %v2015_v3, %v1513_v14  ;;  %v1204_v18 = vmul.f32 1.442695, %v1151_v15 }
 0x2d6   : > { %v2019_v19 = vpop.eup %2018  ;;  %v1246_v21 = vadd.f32 1.0, %v2017_v16 }
 0x2d7   : > { %v1518_v22 = vsel %vm1517_vm12, %v2015_v3, %v1514_v17  ;;  %v1525_v23 = vmul.f32 %v2019_v19, %v1245_v5  ;;  %2020 = vpow2.f32 %v1204_v18  ;;  %vm1530_vm14 = vweird.f32 %v2019_v19 }
 0x2d8   : > { %v1523_v24 = vsel %vm1520_vm13, %v1522_v20, %v1518_v22  ;;  %2022 = vrcp.f32 %v1246_v21  ;;  %v1100_v32 = vpop.f32.mrf.mxu3  ;;  %vm1531_vm0 = vmor %vm1529_vm15, %vm1530_vm14  ;;  %v1549_v45 = vand.u32 2147483648, %v1246_v21  ;;  %v1547_v47 = vand.u32 2147483647, %v1246_v21 }
 0x2d9   : > { %1724 = vst [vmem:[%s2559_s14 + $0x90] sm:$0xff] %v1523_v24  ;;  %v1526_v25 = vsub.f32 1.0, %v1525_v23  ;;  %v1101_v27 = vadd.f32 %v2612_v26, %v1100_v32  ;;  %vm1543_vm3 = vweird.f32 %v1246_v21 }
 0x2da   : > { %v1550_v53 = vor.u32 1.1754944e-38, %v1549_v45  ;;  %vm1548_vm5 = vcmp.eq.f32.partialorder %v1547_v47, 8.507059e+37 }
 0x2db   : > { %v1527_v29 = vmul.f32 %v2019_v19, %v1526_v25  ;;  %v1152_v31 = vsub.f32 0.0, %v1101_v27 }
 0x2dd   : > { %v2021_v33 = vpop.eup %2020  ;;  %v1528_v40 = vadd.f32 %v2019_v19, %v1527_v29  ;;  %v1206_v34 = vmul.f32 1.442695, %v1152_v31 }
 0x2de   : > { %v2023_v35 = vpop.eup %2022  ;;  %v1247_v13 = vadd.f32 1.0, %v2021_v33 }
 0x2df   : > { %v1532_v38 = vsel %vm1531_vm0, %v2019_v19, %v1528_v40  ;;  %v1539_v39 = vmul.f32 %v2023_v35, %v1246_v21  ;;  %2024 = vpow2.f32 %v1206_v34  ;;  %vm1544_vm2 = vweird.f32 %v2023_v35 }
 0x2e0   : > { %v1537_v41 = vsel %vm1534_vm1, %v1536_v37, %v1532_v38  ;;  %2026 = vrcp.f32 %v1247_v13  ;;  %v1103_v42 = vpop.f32.mrf.mxu3  ;;  %vm1545_vm4 = vmor %vm1543_vm3, %vm1544_vm2  ;;  %v1563_v61 = vand.u32 2147483648, %v1247_v13  ;;  %v1561_v63 = vand.u32 2147483647, %v1247_v13 }
 0x2e1   : > { %1725 = vst [vmem:[%s2559_s14 + $0x98] sm:$0xff] %v1537_v41  ;;  %v1540_v43 = vsub.f32 1.0, %v1539_v39  ;;  %v1104_v44 = vadd.f32 %v2612_v26, %v1103_v42  ;;  %vm1557_vm7 = vweird.f32 %v1247_v13 }
 0x2e2   : > { %v1564_v5 = vor.u32 1.1754944e-38, %v1563_v61  ;;  %vm1562_vm9 = vcmp.eq.f32.partialorder %v1561_v63, 8.507059e+37 }
 0x2e3   : > { %v1541_v46 = vmul.f32 %v2023_v35, %v1540_v43  ;;  %v1153_v48 = vsub.f32 0.0, %v1104_v44 }
 0x2e5   : > { %v2025_v49 = vpop.eup %2024  ;;  %v1542_v50 = vadd.f32 %v2023_v35, %v1541_v46  ;;  %v1208_v51 = vmul.f32 1.442695, %v1153_v48 }
 0x2e6   : > { %v2027_v52 = vpop.eup %2026  ;;  %v1248_v54 = vadd.f32 1.0, %v2025_v49 }
 0x2e7   : > { %v1546_v55 = vsel %vm1545_vm4, %v2023_v35, %v1542_v50  ;;  %v1553_v56 = vmul.f32 %v2027_v52, %v1247_v13  ;;  %2028 = vpow2.f32 %v1208_v51  ;;  %vm1558_vm6 = vweird.f32 %v2027_v52 }
 0x2e8   : > { %v1551_v57 = vsel %vm1548_vm5, %v1550_v53, %v1546_v55  ;;  %2030 = vrcp.f32 %v1248_v54  ;;  %v1106_v58 = vpop.f32.mrf.mxu3  ;;  %vm1559_vm8 = vmor %vm1557_vm7, %vm1558_vm6  ;;  %v1577_v14 = vand.u32 2147483648, %v1248_v54  ;;  %v1575_v15 = vand.u32 2147483647, %v1248_v54 }
 0x2e9   : > { %1726 = vst [vmem:[%s2559_s14 + $0xa0] sm:$0xff] %v1551_v57  ;;  %v1554_v59 = vsub.f32 1.0, %v1553_v56  ;;  %v1107_v60 = vadd.f32 %v2612_v26, %v1106_v58  ;;  %vm1571_vm11 = vweird.f32 %v1248_v54 }
 0x2ea   : > { %v1578_v21 = vor.u32 1.1754944e-38, %v1577_v14  ;;  %vm1576_vm13 = vcmp.eq.f32.partialorder %v1575_v15, 8.507059e+37 }
 0x2eb   : > { %v1555_v62 = vmul.f32 %v2027_v52, %v1554_v59  ;;  %v1154_v0 = vsub.f32 0.0, %v1107_v60 }
 0x2ed   : > { %v2029_v1 = vpop.eup %2028  ;;  %v1556_v2 = vadd.f32 %v2027_v52, %v1555_v62  ;;  %v1210_v3 = vmul.f32 1.442695, %v1154_v0 }
 0x2ee   : > { %v2031_v4 = vpop.eup %2030  ;;  %v1249_v6 = vadd.f32 1.0, %v2029_v1 }
 0x2ef   : > { %v1560_v7 = vsel %vm1559_vm8, %v2027_v52, %v1556_v2  ;;  %v1567_v8 = vmul.f32 %v2031_v4, %v1248_v54  ;;  %2032 = vpow2.f32 %v1210_v3  ;;  %vm1572_vm10 = vweird.f32 %v2031_v4 }
 0x2f0   : > { %v1565_v9 = vsel %vm1562_vm9, %v1564_v5, %v1560_v7  ;;  %2034 = vrcp.f32 %v1249_v6  ;;  %v1109_v10 = vpop.f32.mrf.mxu3  ;;  %vm1573_vm12 = vmor %vm1571_vm11, %vm1572_vm10  ;;  %v1591_v29 = vand.u32 2147483648, %v1249_v6  ;;  %v1589_v31 = vand.u32 2147483647, %v1249_v6 }
 0x2f1   : > { %1727 = vst [vmem:[%s2559_s14 + $0xa8] sm:$0xff] %v1565_v9  ;;  %v1568_v11 = vsub.f32 1.0, %v1567_v8  ;;  %v1110_v12 = vadd.f32 %v2612_v26, %v1109_v10  ;;  %vm1585_vm15 = vweird.f32 %v1249_v6 }
 0x2f2   : > { %v1592_v13 = vor.u32 1.1754944e-38, %v1591_v29  ;;  %vm1590_vm1 = vcmp.eq.f32.partialorder %v1589_v31, 8.507059e+37 }
 0x2f3   : > { %v1569_v36 = vmul.f32 %v2031_v4, %v1568_v11  ;;  %v1155_v16 = vsub.f32 0.0, %v1110_v12 }
 0x2f5   : > { %v2033_v17 = vpop.eup %2032  ;;  %v1570_v18 = vadd.f32 %v2031_v4, %v1569_v36  ;;  %v1212_v19 = vmul.f32 1.442695, %v1155_v16 }
 0x2f6   : > { %v2035_v20 = vpop.eup %2034  ;;  %v1250_v22 = vadd.f32 1.0, %v2033_v17 }
 0x2f7   : > { %v1574_v23 = vsel %vm1573_vm12, %v2031_v4, %v1570_v18  ;;  %v1581_v24 = vmul.f32 %v2035_v20, %v1249_v6  ;;  %2036 = vpow2.f32 %v1212_v19  ;;  %vm1586_vm14 = vweird.f32 %v2035_v20 }
 0x2f8   : > { %v1579_v32 = vsel %vm1576_vm13, %v1578_v21, %v1574_v23  ;;  %2038 = vrcp.f32 %v1250_v22  ;;  %v1112_v25 = vpop.f32.mrf.mxu3  ;;  %vm1587_vm0 = vmor %vm1585_vm15, %vm1586_vm14  ;;  %v1605_v46 = vand.u32 2147483648, %v1250_v22  ;;  %v1603_v48 = vand.u32 2147483647, %v1250_v22 }
 0x2f9   : > { %1728 = vst [vmem:[%s2559_s14 + $0xb0] sm:$0xff] %v1579_v32  ;;  %v1582_v27 = vsub.f32 1.0, %v1581_v24  ;;  %v1113_v28 = vadd.f32 %v2612_v26, %v1112_v25  ;;  %vm1599_vm3 = vweird.f32 %v1250_v22 }
 0x2fa   : > { %v1606_v54 = vor.u32 1.1754944e-38, %v1605_v46  ;;  %vm1604_vm5 = vcmp.eq.f32.partialorder %v1603_v48, 8.507059e+37 }
 0x2fb   : > { %v1583_v30 = vmul.f32 %v2035_v20, %v1582_v27  ;;  %v1156_v33 = vsub.f32 0.0, %v1113_v28 }
 0x2fd   : > { %v2037_v40 = vpop.eup %2036  ;;  %v1584_v34 = vadd.f32 %v2035_v20, %v1583_v30  ;;  %v1214_v35 = vmul.f32 1.442695, %v1156_v33 }
 0x2fe   : > { %v2039_v37 = vpop.eup %2038  ;;  %v1251_v38 = vadd.f32 1.0, %v2037_v40 }
 0x2ff   : > { %v1588_v39 = vsel %vm1587_vm0, %v2035_v20, %v1584_v34  ;;  %v1595_v41 = vmul.f32 %v2039_v37, %v1250_v22  ;;  %2040 = vpow2.f32 %v1214_v35  ;;  %vm1600_vm2 = vweird.f32 %v2039_v37 }
 0x300   : > { %v1593_v42 = vsel %vm1590_vm1, %v1592_v13, %v1588_v39  ;;  %2042 = vrcp.f32 %v1251_v38  ;;  %v1115_v43 = vpop.f32.mrf.mxu3  ;;  %vm1601_vm4 = vmor %vm1599_vm3, %vm1600_vm2  ;;  %v1619_v62 = vand.u32 2147483648, %v1251_v38  ;;  %v1617_v0 = vand.u32 2147483647, %v1251_v38 }
 0x301   : > { %1729 = vst [vmem:[%s2559_s14 + $0xb8] sm:$0xff] %v1593_v42  ;;  %v1596_v44 = vsub.f32 1.0, %v1595_v41  ;;  %v1116_v45 = vadd.f32 %v2612_v26, %v1115_v43  ;;  %vm1613_vm7 = vweird.f32 %v1251_v38 }
 0x302   : > { %v1620_v6 = vor.u32 1.1754944e-38, %v1619_v62  ;;  %vm1618_vm9 = vcmp.eq.f32.partialorder %v1617_v0, 8.507059e+37 }
 0x303   : > { %v1597_v47 = vmul.f32 %v2039_v37, %v1596_v44  ;;  %v1157_v49 = vsub.f32 0.0, %v1116_v45 }
 0x305   : > { %v2041_v50 = vpop.eup %2040  ;;  %v1598_v51 = vadd.f32 %v2039_v37, %v1597_v47  ;;  %v1216_v52 = vmul.f32 1.442695, %v1157_v49 }
 0x306   : > { %v2043_v53 = vpop.eup %2042  ;;  %v1252_v55 = vadd.f32 1.0, %v2041_v50 }
 0x307   : > { %v1602_v56 = vsel %vm1601_vm4, %v2039_v37, %v1598_v51  ;;  %v1609_v57 = vmul.f32 %v2043_v53, %v1251_v38  ;;  %2044 = vpow2.f32 %v1216_v52  ;;  %vm1614_vm6 = vweird.f32 %v2043_v53 }
 0x308   : > { %v1607_v58 = vsel %vm1604_vm5, %v1606_v54, %v1602_v56  ;;  %2046 = vrcp.f32 %v1252_v55  ;;  %v1118_v59 = vpop.f32.mrf.mxu3  ;;  %vm1615_vm8 = vmor %vm1613_vm7, %vm1614_vm6  ;;  %v1633_v36 = vand.u32 2147483648, %v1252_v55  ;;  %v1631_v16 = vand.u32 2147483647, %v1252_v55 }
 0x309   : > { %1730 = vst [vmem:[%s2559_s14 + $0xc0] sm:$0xff] %v1607_v58  ;;  %v1610_v60 = vsub.f32 1.0, %v1609_v57  ;;  %v1119_v61 = vadd.f32 %v2612_v26, %v1118_v59  ;;  %vm1627_vm11 = vweird.f32 %v1252_v55 }
 0x30a   : > { %v1634_v22 = vor.u32 1.1754944e-38, %v1633_v36  ;;  %vm1632_vm13 = vcmp.eq.f32.partialorder %v1631_v16, 8.507059e+37 }
 0x30b   : > { %v1611_v63 = vmul.f32 %v2043_v53, %v1610_v60  ;;  %v1158_v1 = vsub.f32 0.0, %v1119_v61 }
 0x30d   : > { %v2045_v2 = vpop.eup %2044  ;;  %v1612_v3 = vadd.f32 %v2043_v53, %v1611_v63  ;;  %v1218_v4 = vmul.f32 1.442695, %v1158_v1 }
 0x30e   : > { %v2047_v5 = vpop.eup %2046  ;;  %v1253_v7 = vadd.f32 1.0, %v2045_v2 }
 0x30f   : > { %v1616_v8 = vsel %vm1615_vm8, %v2043_v53, %v1612_v3  ;;  %v1623_v9 = vmul.f32 %v2047_v5, %v1252_v55  ;;  %2048 = vpow2.f32 %v1218_v4  ;;  %vm1628_vm10 = vweird.f32 %v2047_v5 }
 0x310   : > { %v1621_v10 = vsel %vm1618_vm9, %v1620_v6, %v1616_v8  ;;  %2050 = vrcp.f32 %v1253_v7  ;;  %v1121_v11 = vpop.f32.mrf.mxu3  ;;  %vm1629_vm12 = vmor %vm1627_vm11, %vm1628_vm10  ;;  %v1647_v30 = vand.u32 2147483648, %v1253_v7  ;;  %v1645_v33 = vand.u32 2147483647, %v1253_v7 }
 0x311   : > { %1731 = vst [vmem:[%s2559_s14 + $0xc8] sm:$0xff] %v1621_v10  ;;  %v1624_v12 = vsub.f32 1.0, %v1623_v9  ;;  %v1122_v14 = vadd.f32 %v2612_v26, %v1121_v11  ;;  %vm1641_vm15 = vweird.f32 %v1253_v7 }
 0x312   : > { %v1648_v38 = vor.u32 1.1754944e-38, %v1647_v30  ;;  %vm1646_vm1 = vcmp.eq.f32.partialorder %v1645_v33, 8.507059e+37 }
 0x313   : > { %v1625_v15 = vmul.f32 %v2047_v5, %v1624_v12  ;;  %v1159_v17 = vsub.f32 0.0, %v1122_v14 }
 0x315   : > { %v2049_v18 = vpop.eup %2048  ;;  %v1626_v19 = vadd.f32 %v2047_v5, %v1625_v15  ;;  %v1220_v20 = vmul.f32 1.442695, %v1159_v17 }
 0x316   : > { %v2051_v21 = vpop.eup %2050  ;;  %v1254_v23 = vadd.f32 1.0, %v2049_v18 }
 0x317   : > { %v1630_v24 = vsel %vm1629_vm12, %v2047_v5, %v1626_v19  ;;  %v1637_v32 = vmul.f32 %v2051_v21, %v1253_v7  ;;  %2052 = vpow2.f32 %v1220_v20  ;;  %vm1642_vm14 = vweird.f32 %v2051_v21 }
 0x318   : > { %v1635_v25 = vsel %vm1632_vm13, %v1634_v22, %v1630_v24  ;;  %2054 = vrcp.f32 %v1254_v23  ;;  %v1124_v27 = vpop.f32.mrf.mxu3  ;;  %vm1643_vm0 = vmor %vm1641_vm15, %vm1642_vm14  ;;  %v1661_v47 = vand.u32 2147483648, %v1254_v23  ;;  %v1659_v49 = vand.u32 2147483647, %v1254_v23 }
 0x319   : > { %1732 = vst [vmem:[%s2559_s14 + $0xd0] sm:$0xff] %v1635_v25  ;;  %v1638_v28 = vsub.f32 1.0, %v1637_v32  ;;  %v1125_v29 = vadd.f32 %v2612_v26, %v1124_v27  ;;  %vm1655_vm3 = vweird.f32 %v1254_v23 }
 0x31a   : > { %v1662_v55 = vor.u32 1.1754944e-38, %v1661_v47  ;;  %vm1660_vm5 = vcmp.eq.f32.partialorder %v1659_v49, 8.507059e+37 }
 0x31b   : > { %v1639_v31 = vmul.f32 %v2051_v21, %v1638_v28  ;;  %v1160_v40 = vsub.f32 0.0, %v1125_v29 }
 0x31d   : > { %v2053_v34 = vpop.eup %2052  ;;  %v1640_v35 = vadd.f32 %v2051_v21, %v1639_v31  ;;  %v1222_v37 = vmul.f32 1.442695, %v1160_v40 }
 0x31e   : > { %v2055_v13 = vpop.eup %2054  ;;  %v1255_v39 = vadd.f32 1.0, %v2053_v34 }
 0x31f   : > { %v1644_v41 = vsel %vm1643_vm0, %v2051_v21, %v1640_v35  ;;  %v1651_v42 = vmul.f32 %v2055_v13, %v1254_v23  ;;  %2056 = vpow2.f32 %v1222_v37  ;;  %vm1656_vm2 = vweird.f32 %v2055_v13 }
 0x320   : > { %v1649_v43 = vsel %vm1646_vm1, %v1648_v38, %v1644_v41  ;;  %2058 = vrcp.f32 %v1255_v39  ;;  %v1127_v44 = vpop.f32.mrf.mxu3  ;;  %vm1657_vm4 = vmor %vm1655_vm3, %vm1656_vm2  ;;  %v1675_v60 = vand.u32 2147483648, %v1255_v39  ;;  %v1673_v62 = vand.u32 2147483647, %v1255_v39 }
 0x321   : > { %1733 = vst [vmem:[%s2559_s14 + $0xd8] sm:$0xff] %v1649_v43  ;;  %v1652_v45 = vsub.f32 1.0, %v1651_v42  ;;  %v1128_v46 = vadd.f32 %v2612_v26, %v1127_v44  ;;  %vm1669_vm7 = vweird.f32 %v1255_v39 }
 0x322   : > { %v1676_v2 = vor.u32 1.1754944e-38, %v1675_v60  ;;  %vm1674_vm9 = vcmp.eq.f32.partialorder %v1673_v62, 8.507059e+37 }
 0x323   : > { %v1653_v48 = vmul.f32 %v2055_v13, %v1652_v45  ;;  %v1161_v50 = vsub.f32 0.0, %v1128_v46 }
 0x325   : > { %v2057_v51 = vpop.eup %2056  ;;  %v1654_v52 = vadd.f32 %v2055_v13, %v1653_v48  ;;  %v1224_v53 = vmul.f32 1.442695, %v1161_v50 }
 0x326   : > { %v2059_v54 = vpop.eup %2058  ;;  %v1256_v56 = vadd.f32 1.0, %v2057_v51 }
 0x327   : > { %v1658_v57 = vsel %vm1657_vm4, %v2055_v13, %v1654_v52  ;;  %v1665_v58 = vmul.f32 %v2059_v54, %v1255_v39  ;;  %2060 = vpow2.f32 %v1224_v53  ;;  %vm1670_vm6 = vweird.f32 %v2059_v54 }
 0x328   : > { %v1663_v59 = vsel %vm1660_vm5, %v1662_v55, %v1658_v57  ;;  %2062 = vrcp.f32 %v1256_v56  ;;  %vm1671_vm8 = vmor %vm1669_vm7, %vm1670_vm6  ;;  %v1689_v8 = vand.u32 2147483648, %v1256_v56  ;;  %v1687_v10 = vand.u32 2147483647, %v1256_v56 }
 0x329   : > { %1734 = vst [vmem:[%s2559_s14 + $0xe0] sm:$0xff] %v1663_v59  ;;  %v1666_v26 = vsub.f32 1.0, %v1665_v58  ;;  %vm1683_vm11 = vweird.f32 %v1256_v56 }
 0x32a   : > { %v1690_v14 = vor.u32 1.1754944e-38, %v1689_v8  ;;  %vm1688_vm13 = vcmp.eq.f32.partialorder %v1687_v10, 8.507059e+37 }
 0x32b   : > { %v1667_v61 = vmul.f32 %v2059_v54, %v1666_v26 }
 0x32d   : > { %v2061_v63 = vpop.eup %2060  ;;  %v1668_v0 = vadd.f32 %v2059_v54, %v1667_v61 }
 0x32e   : > { %v2063_v1 = vpop.eup %2062  ;;  %v1257_v3 = vadd.f32 1.0, %v2061_v63 }
 0x32f   : > { %v1672_v4 = vsel %vm1671_vm8, %v2059_v54, %v1668_v0  ;;  %v1679_v5 = vmul.f32 %v2063_v1, %v1256_v56  ;;  %vm1684_vm10 = vweird.f32 %v2063_v1 }
 0x330   : > { %v1677_v6 = vsel %vm1674_vm9, %v1676_v2, %v1672_v4  ;;  %2064 = vrcp.f32 %v1257_v3  ;;  %vm1685_vm12 = vmor %vm1683_vm11, %vm1684_vm10  ;;  %v1703_v18 = vand.u32 2147483648, %v1257_v3  ;;  %v1701_v20 = vand.u32 2147483647, %v1257_v3 }
 0x331   : > { %1735 = vst [vmem:[%s2559_s14 + $0xe8] sm:$0xff] %v1677_v6  ;;  %v1680_v7 = vsub.f32 1.0, %v1679_v5  ;;  %vm1697_vm15 = vweird.f32 %v1257_v3 }
 0x332   : > { %v1704_v22 = vor.u32 1.1754944e-38, %v1703_v18  ;;  %vm1702_vm1 = vcmp.eq.f32.partialorder %v1701_v20, 8.507059e+37 }
 0x333   : > { %v1681_v9 = vmul.f32 %v2063_v1, %v1680_v7 }
 0x335   : > { %v1682_v11 = vadd.f32 %v2063_v1, %v1681_v9 }
 0x336   : > { %v2065_v12 = vpop.eup %2064 }
 0x337   : > { %v1686_v36 = vsel %vm1685_vm12, %v2063_v1, %v1682_v11  ;;  %v1693_v15 = vmul.f32 %v2065_v12, %v1257_v3  ;;  %vm1698_vm14 = vweird.f32 %v2065_v12 }
 0x338   : > { %v1691_v16 = vsel %vm1688_vm13, %v1690_v14, %v1686_v36  ;;  %vm1699_vm0 = vmor %vm1697_vm15, %vm1698_vm14 }
 0x339   : > { %1736 = vst [vmem:[%s2559_s14 + $0xf0] sm:$0xff] %v1691_v16  ;;  %v1694_v17 = vsub.f32 1.0, %v1693_v15 }
 0x33b   : > { %v1695_v19 = vmul.f32 %v2065_v12, %v1694_v17 }
 0x33d   : > { %v1696_v21 = vadd.f32 %v2065_v12, %v1695_v19 }
 0x33f   : > { %v1700_v23 = vsel %vm1699_vm0, %v2065_v12, %v1696_v21 }
 0x340   : > { %v1705_v24 = vsel %vm1702_vm1, %v1704_v22, %v1700_v23 }
 0x341   : > { %1737 = vst [vmem:[%s2559_s14 + $0xf8] sm:$0xff] %v1705_v24 }
 0x342   : > { %2094 = shalt.err (!%p2091_p3)
}
 0x343   : > { %s2131_s21 = smov 128   ;;  %s2132_s14 = smov 8  }
 0x344   : > { %1893 = dma.vmem_to_hbm [thread:$0]  (%p2221_p5), %s1752_s13, 4096, %s1754_s26, %s1739_s27, %s2131_s21, %s2131_s21, %s2132_s14  }
 0x345 PF: > { %p1899_p4 = scmp.ge.s32.totalorder %s2129_s12, 2  ;;  %s1768_s25 = sand.u32 1, %s2117_s30  }
 0x346   : > { %s1769_s16 = scalar_lea.sflag [#allocation3], %s1768_s25 }
 0x347   : > { %p1896_p7 = pnand %p1899_p4, %p2225_p6 }
 0x349   : > { %p1897_p8 = pneg %p1896_p7 }
 0x34b   : > { %2112 = dma.done.wait (%p1897_p8), %s1769_s16, 4096  }
 0x34c   : > { %2114 = vsyncadd (%p1897_p8), %s1769_s16, 4294963200  ;;  %p19_p9 = scmp.ge.s32.totalorder %s2208_s15, 4   ;;  %s2683_s30 = smov %s2121_s10 }
 0x34d   : > { %s2684_s10 = smov %s2125_s11  ;;  %s2685_s11 = smov %s2219_s18 }
 0x34e   : > { %s2686_s12 = smov %s2208_s15  ;;  %21 = sbr.rel (!%p19_p9) target bundleno = 3 (0x3), region = 91 }
 0x353   :  { %1775 = vsyncpa [#allocation3], 1 }
 0x354   :  { %1777 = vsyncpa [#allocation3 + $0x1], 1 }

</bundles_post_ra>
